<compile_context>
chip_gen: v6e
topology: v6e:2x2x1
jax: 0.10.0
libtpu: 0.0.40
codegen_flags: <defaults>
</compile_context>

<pallas_src>
import functools
import math

import jax
import jax.numpy as jnp
from jax.experimental import pallas as pl
from jax.experimental.pallas import tpu as pltpu


def _sum_all(x):
    # Fold leading (untiled) axes elementwise first, then one full 2-D reduce over
    # the (sublane, lane) tile -- the best-supported lowering path.
    if x.ndim > 2:
        x = jnp.sum(x, axis=tuple(range(x.ndim - 2)))
    return jnp.sum(x)


def _loss_kernel(pred_ref, label_ref, out_ref, wsum_acc, nz_acc, *,
                 weights, thresholds, use_mae, nonzero_mean, total_n):
    step = pl.program_id(0)

    @pl.when(step == 0)
    def _init():
        wsum_acc[...] = jnp.zeros_like(wsum_acc)
        nz_acc[...] = jnp.zeros_like(nz_acc)

    p = pred_ref[...].astype(jnp.float32)
    lab = label_ref[...].astype(jnp.float32)

    diff = p - lab
    # L1Loss / MSELoss with reduction='none'
    err = jnp.abs(diff) if use_mae else diff * diff

    w_c1, w_c2, w_c3, w_c4, w_c5 = weights
    t1, t10, t30, t50 = thresholds
    # Chained selects reproduce the torch.where chain bit-exactly:
    #   lab <  1          -> w_c1
    #   1  <= lab < 10    -> w_c2   (lab == 1 tie-break to w_c2, as in the module)
    #   10 <= lab < 30    -> w_c3
    #   30 <= lab < 50    -> w_c4
    #   lab >= 50         -> w_c5
    # When log1p_target is set, the thresholds were pre-mapped through log1p at
    # trace time (expm1 is strictly monotone, expm1(0) == 0), so no per-element
    # expm1 is ever computed.
    w = jnp.where(lab >= t50, jnp.float32(w_c5),
        jnp.where(lab >= t30, jnp.float32(w_c4),
        jnp.where(lab >= t10, jnp.float32(w_c3),
        jnp.where(lab >= t1, jnp.float32(w_c2), jnp.float32(w_c1)))))

    # Two reductions only (weighted sum + nonzero count); the plain-error sum is
    # recovered from the wsum/(w_c1*n) identity in the nz==0 fallback.
    wsum_acc[...] += _sum_all(err * w)
    nz_acc[...] += _sum_all((lab != 0.0).astype(jnp.float32))

    @pl.when(step == pl.num_programs(0) - 1)
    def _finalize():
        wsum = wsum_acc[...]                       # (1, 1)
        nz = nz_acc[...]                           # (1, 1)
        n_f = jnp.float32(total_n)
        # Safe denominator: the nz==0 branch below takes over in that case, the
        # clamp just keeps the dead path free of inf/nan.
        loss_nonzero = wsum / jnp.maximum(nz, 1.0) if nonzero_mean else wsum / n_f
        # nz == 0  =>  all labels are 0  =>  all weights are w_c1, so
        # error.mean() == wsum / (w_c1 * n).
        loss = jnp.where(nz == 0.0, wsum / (jnp.float32(w_c1) * n_f), loss_nonzero)
        # Lane-dense (1, 128) writeback: one unmasked vst.
        out_ref[...] = jnp.broadcast_to(loss, out_ref.shape).astype(out_ref.dtype)


def label_based_weighted_regression_loss(pred, label, *, weights, use_mae,
                                         nonzero_mean, log1p_target=False,
                                         max_block_batch=16):
    assert pred.shape == label.shape, "Prediction and label must have the same shape"
    bs = pred.shape[0]
    rest = pred.shape[1:]

    # Largest divisor of bs that is <= max_block_batch: blocks are always exact,
    # so no in-kernel masking is needed.  ~1.5 MiB per input block at the cap,
    # well within the default scoped VMEM on every TPU generation even with
    # double-buffering of both inputs.
    block_b = 1
    for b in range(min(bs, max_block_batch), 0, -1):
        if bs % b == 0:
            block_b = b
            break
    grid = (bs // block_b,)

    raw_thresholds = (1.0, 10.0, 30.0, 50.0)
    thresholds = (tuple(math.log1p(t) for t in raw_thresholds)
                  if log1p_target else raw_thresholds)

    kernel = functools.partial(
        _loss_kernel,
        weights=tuple(float(w) for w in weights),
        thresholds=tuple(float(t) for t in thresholds),
        use_mae=bool(use_mae),
        nonzero_mean=bool(nonzero_mean),
        total_n=pred.size,
    )

    block_shape = (block_b,) + rest
    n_rest = len(rest)
    in_spec = pl.BlockSpec(block_shape, lambda i: (i,) + (0,) * n_rest)

    out = pl.pallas_call(
        kernel,
        out_shape=jax.ShapeDtypeStruct((1, 128), jnp.float32),
        grid_spec=pltpu.PrefetchScalarGridSpec(
            num_scalar_prefetch=0,
            grid=grid,
            in_specs=[in_spec, in_spec],
            out_specs=pl.BlockSpec((1, 128), lambda i: (0, 0)),
            scratch_shapes=[pltpu.VMEM((1, 1), jnp.float32),   # wsum accumulator
                            pltpu.VMEM((1, 1), jnp.float32)],  # nz accumulator
        ),
        compiler_params=pltpu.CompilerParams(
            dimension_semantics=("arbitrary",),       # accumulator carries across grid
            vmem_limit_bytes=32 * 1024 * 1024,
        ),
    )(pred, label)
    return out[0, 0]


def _reference(pred, label, *, weights, use_mae, nonzero_mean, log1p_target=False):
    """Pure-JAX reference mirroring the PyTorch forward."""
    pred = pred.astype(jnp.float32)
    label = label.astype(jnp.float32)
    err = jnp.abs(pred - label) if use_mae else (pred - label) ** 2
    lab = jnp.expm1(label) if log1p_target else label
    nz = jnp.sum(lab != 0.0).astype(jnp.float32)
    w_c1, w_c2, w_c3, w_c4, w_c5 = weights
    w = jnp.ones_like(err)
    w = jnp.where(lab <= 1.0, w_c1, w)
    w = jnp.where((lab >= 1.0) & (lab < 10.0), w_c2, w)
    w = jnp.where((lab >= 10.0) & (lab < 30.0), w_c3, w)
    w = jnp.where((lab >= 30.0) & (lab < 50.0), w_c4, w)
    w = jnp.where(lab >= 50.0, w_c5, w)
    we = err * w
    loss_nz = we.sum() / nz if nonzero_mean else we.mean()
    return jnp.where(nz == 0.0, err.mean(), loss_nz)


if __name__ == "__main__":
    # Deterministic "config" (module __init__ inputs).
    weights = (1.0, 2.0, 5.0, 10.0, 20.0)

    key = jax.random.PRNGKey(0)
    k1, k2, k3 = jax.random.split(key, 3)
    shape = (2, 3, 57, 81)   # [bs, 3, 57, 81] as documented in the module
    pred = jax.random.normal(k1, shape, dtype=jnp.float32) * 20.0
    # labels spanning all weight buckets, with some exact zeros
    label = jax.random.uniform(k2, shape, dtype=jnp.float32, minval=0.0, maxval=60.0)
    zero_mask = jax.random.uniform(k3, shape) < 0.2
    label = jnp.where(zero_mask, 0.0, label)

    cases = [
        # (use_mae, nonzero_mean, log1p_target, label)
        (False, True, False, label),                                   # default MSE / nonzero mean
        (True, False, False, label),                                   # MAE / plain mean
        (False, True, True, jnp.log1p(label)),                         # log1p-scale targets
        (False, True, False, jnp.zeros(shape, dtype=jnp.float32)),     # nz == 0 fallback
    ]
    for use_mae, nonzero_mean, log1p_target, lab in cases:
        got = label_based_weighted_regression_loss(
            pred, lab, weights=weights, use_mae=use_mae,
            nonzero_mean=nonzero_mean, log1p_target=log1p_target)
        got = jax.block_until_ready(got)
        want = _reference(pred, lab, weights=weights, use_mae=use_mae,
                          nonzero_mean=nonzero_mean, log1p_target=log1p_target)
        assert jnp.allclose(got, want, rtol=1e-5, atol=1e-5), \
            (use_mae, nonzero_mean, log1p_target, got, want)

    print("KERNEL_OK")
</pallas_src>

<mosaic_0001>
module attributes {stable_mosaic.version = 11 : i64} {
  func.func @_loss_kernel(%arg0: i32, %arg1: memref<2x3x57x81xf32, #tpu.memory_space<vmem>>, %arg2: memref<2x3x57x81xf32, #tpu.memory_space<vmem>>, %arg3: memref<1x128xf32, #tpu.memory_space<vmem>>, %arg4: memref<1x1xf32, #tpu.memory_space<vmem>>, %arg5: memref<1x1xf32, #tpu.memory_space<vmem>>) attributes {dimension_semantics = [#tpu.dimension_semantics<arbitrary>], iteration_bounds = array<i64: 1>, scalar_prefetch = 0 : i64, scratch_operands = 2 : i64, tpu.core_type = #tpu.core_type<tc>, window_params = [{transform_indices = @transform_0, window_bounds = array<i64: 2, 3, 57, 81>}, {transform_indices = @transform_1, window_bounds = array<i64: 2, 3, 57, 81>}, {pipeline_mode = #tpu.pipeline_mode<synchronous>, transform_indices = @transform_2, window_bounds = array<i64: 1, 128>}]} {
    %c0_i32 = arith.constant 0 : i32
    %0 = arith.cmpi eq, %arg0, %c0_i32 : i32
    %1 = arith.extui %0 : i1 to i32
    %c0_i32_0 = arith.constant 0 : i32
    %2 = arith.cmpi ne, %1, %c0_i32_0 : i32
    scf.if %2 {
      %cst_31 = arith.constant 0.000000e+00 : f32
      %50 = vector.broadcast %cst_31 : f32 to vector<1x1xf32>
      %c0_32 = arith.constant 0 : index
      %c0_33 = arith.constant 0 : index
      %51 = vector.load %arg4[%c0_32, %c0_33] : memref<1x1xf32, #tpu.memory_space<vmem>>, vector<1x1xf32>
      tpu.vector_store %arg4[%c0_32, %c0_33], %50 {strides = array<i32>} : memref<1x1xf32, #tpu.memory_space<vmem>>, vector<1x1xf32>,
      %cst_34 = arith.constant 0.000000e+00 : f32
      %52 = vector.broadcast %cst_34 : f32 to vector<1x1xf32>
      %c0_35 = arith.constant 0 : index
      %c0_36 = arith.constant 0 : index
      %53 = vector.load %arg5[%c0_35, %c0_36] : memref<1x1xf32, #tpu.memory_space<vmem>>, vector<1x1xf32>
      tpu.vector_store %arg5[%c0_35, %c0_36], %52 {strides = array<i32>} : memref<1x1xf32, #tpu.memory_space<vmem>>, vector<1x1xf32>,
    } else {
    }
    %c0 = arith.constant 0 : index
    %c0_1 = arith.constant 0 : index
    %c0_2 = arith.constant 0 : index
    %c0_3 = arith.constant 0 : index
    %3 = vector.load %arg1[%c0, %c0_1, %c0_2, %c0_3] : memref<2x3x57x81xf32, #tpu.memory_space<vmem>>, vector<2x3x57x81xf32>
    %c0_4 = arith.constant 0 : index
    %c0_5 = arith.constant 0 : index
    %c0_6 = arith.constant 0 : index
    %c0_7 = arith.constant 0 : index
    %4 = vector.load %arg2[%c0_4, %c0_5, %c0_6, %c0_7] : memref<2x3x57x81xf32, #tpu.memory_space<vmem>>, vector<2x3x57x81xf32>
    %5 = arith.subf %3, %4 : vector<2x3x57x81xf32>
    %6 = arith.mulf %5, %5 : vector<2x3x57x81xf32>
    %cst = arith.constant 5.000000e+01 : f32
    %7 = vector.broadcast %cst : f32 to vector<2x3x57x81xf32>
    %8 = arith.cmpf oge, %4, %7 : vector<2x3x57x81xf32>
    %cst_8 = arith.constant 3.000000e+01 : f32
    %9 = vector.broadcast %cst_8 : f32 to vector<2x3x57x81xf32>
    %10 = arith.cmpf oge, %4, %9 : vector<2x3x57x81xf32>
    %cst_9 = arith.constant 1.000000e+01 : f32
    %11 = vector.broadcast %cst_9 : f32 to vector<2x3x57x81xf32>
    %12 = arith.cmpf oge, %4, %11 : vector<2x3x57x81xf32>
    %cst_10 = arith.constant 1.000000e+00 : f32
    %13 = vector.broadcast %cst_10 : f32 to vector<2x3x57x81xf32>
    %14 = arith.cmpf oge, %4, %13 : vector<2x3x57x81xf32>
    %cst_11 = arith.constant 2.000000e+00 : f32
    %cst_12 = arith.constant 1.000000e+00 : f32
    %15 = vector.broadcast %cst_11 : f32 to vector<2x3x57x81xf32>
    %16 = vector.broadcast %cst_12 : f32 to vector<2x3x57x81xf32>
    %17 = arith.select %14, %15, %16 : vector<2x3x57x81xi1>, vector<2x3x57x81xf32>
    %cst_13 = arith.constant 5.000000e+00 : f32
    %18 = vector.broadcast %cst_13 : f32 to vector<2x3x57x81xf32>
    %19 = arith.select %12, %18, %17 : vector<2x3x57x81xi1>, vector<2x3x57x81xf32>
    %cst_14 = arith.constant 1.000000e+01 : f32
    %20 = vector.broadcast %cst_14 : f32 to vector<2x3x57x81xf32>
    %21 = arith.select %10, %20, %19 : vector<2x3x57x81xi1>, vector<2x3x57x81xf32>
    %cst_15 = arith.constant 2.000000e+01 : f32
    %22 = vector.broadcast %cst_15 : f32 to vector<2x3x57x81xf32>
    %23 = arith.select %8, %22, %21 : vector<2x3x57x81xi1>, vector<2x3x57x81xf32>
    %c0_16 = arith.constant 0 : index
    %c0_17 = arith.constant 0 : index
    %24 = vector.load %arg4[%c0_16, %c0_17] : memref<1x1xf32, #tpu.memory_space<vmem>>, vector<1x1xf32>
    %25 = arith.mulf %6, %23 : vector<2x3x57x81xf32>
    %cst_18 = arith.constant dense<0.000000e+00> : vector<57x81xf32>
    %26 = vector.multi_reduction <add>, %25, %cst_18 [0, 1] : vector<2x3x57x81xf32> to vector<57x81xf32>
    %27 = vector.shape_cast %26 : vector<57x81xf32> to vector<1x57x81xf32>
    %cst_19 = arith.constant dense<0.000000e+00> : vector<1xf32>
    %28 = vector.multi_reduction <add>, %27, %cst_19 [1, 2] : vector<1x57x81xf32> to vector<1xf32>
    %29 = vector.shape_cast %28 : vector<1xf32> to vector<1x1x1xf32>
    %30 = vector.extract %29[0, 0, 0] : f32 from vector<1x1x1xf32>
    %31 = vector.broadcast %30 : f32 to vector<1x1xf32>
    %32 = arith.addf %24, %31 : vector<1x1xf32>
    %c0_20 = arith.constant 0 : index
    %c0_21 = arith.constant 0 : index
    %33 = vector.load %arg4[%c0_20, %c0_21] : memref<1x1xf32, #tpu.memory_space<vmem>>, vector<1x1xf32>
    tpu.vector_store %arg4[%c0_20, %c0_21], %32 {strides = array<i32>} : memref<1x1xf32, #tpu.memory_space<vmem>>, vector<1x1xf32>,
    %c0_22 = arith.constant 0 : index
    %c0_23 = arith.constant 0 : index
    %34 = vector.load %arg5[%c0_22, %c0_23] : memref<1x1xf32, #tpu.memory_space<vmem>>, vector<1x1xf32>
    %cst_24 = arith.constant 0.000000e+00 : f32
    %35 = vector.broadcast %cst_24 : f32 to vector<2x3x57x81xf32>
    %36 = arith.cmpf one, %4, %35 : vector<2x3x57x81xf32>
    %37 = arith.extui %36 : vector<2x3x57x81xi1> to vector<2x3x57x81xi32>
    %38 = arith.sitofp %37 : vector<2x3x57x81xi32> to vector<2x3x57x81xf32>
    %cst_25 = arith.constant dense<0.000000e+00> : vector<57x81xf32>
    %39 = vector.multi_reduction <add>, %38, %cst_25 [0, 1] : vector<2x3x57x81xf32> to vector<57x81xf32>
    %40 = vector.shape_cast %39 : vector<57x81xf32> to vector<1x57x81xf32>
    %cst_26 = arith.constant dense<0.000000e+00> : vector<1xf32>
    %41 = vector.multi_reduction <add>, %40, %cst_26 [1, 2] : vector<1x57x81xf32> to vector<1xf32>
    %42 = vector.shape_cast %41 : vector<1xf32> to vector<1x1x1xf32>
    %43 = vector.extract %42[0, 0, 0] : f32 from vector<1x1x1xf32>
    %44 = vector.broadcast %43 : f32 to vector<1x1xf32>
    %45 = arith.addf %34, %44 : vector<1x1xf32>
    %c0_27 = arith.constant 0 : index
    %c0_28 = arith.constant 0 : index
    %46 = vector.load %arg5[%c0_27, %c0_28] : memref<1x1xf32, #tpu.memory_space<vmem>>, vector<1x1xf32>
    tpu.vector_store %arg5[%c0_27, %c0_28], %45 {strides = array<i32>} : memref<1x1xf32, #tpu.memory_space<vmem>>, vector<1x1xf32>,
    %c0_i32_29 = arith.constant 0 : i32
    %47 = arith.cmpi eq, %arg0, %c0_i32_29 : i32
    %48 = arith.extui %47 : i1 to i32
    %c0_i32_30 = arith.constant 0 : i32
    %49 = arith.cmpi ne, %48, %c0_i32_30 : i32
    scf.if %49 {
      %c0_31 = arith.constant 0 : index
      %c0_32 = arith.constant 0 : index
      %50 = vector.load %arg4[%c0_31, %c0_32] : memref<1x1xf32, #tpu.memory_space<vmem>>, vector<1x1xf32>
      %c0_33 = arith.constant 0 : index
      %c0_34 = arith.constant 0 : index
      %51 = vector.load %arg5[%c0_33, %c0_34] : memref<1x1xf32, #tpu.memory_space<vmem>>, vector<1x1xf32>
      %cst_35 = arith.constant 1.000000e+00 : f32
      %52 = vector.broadcast %cst_35 : f32 to vector<1x1xf32>
      %53 = arith.maximumf %51, %52 : vector<1x1xf32>
      %54 = arith.divf %50, %53 : vector<1x1xf32>
      %cst_36 = arith.constant 0.000000e+00 : f32
      %55 = vector.broadcast %cst_36 : f32 to vector<1x1xf32>
      %56 = arith.cmpf oeq, %51, %55 : vector<1x1xf32>
      %cst_37 = arith.constant 1.000000e+00 : f32
      %cst_38 = arith.constant 2.770200e+04 : f32
      %57 = arith.mulf %cst_37, %cst_38 : f32
      %58 = vector.broadcast %57 : f32 to vector<1x1xf32>
      %59 = arith.divf %50, %58 : vector<1x1xf32>
      %60 = arith.select %56, %59, %54 : vector<1x1xi1>, vector<1x1xf32>
      %61 = vector.shape_cast %60 : vector<1x1xf32> to vector<1x1xf32>
      %62 = vector.broadcast %61 : vector<1x1xf32> to vector<1x128xf32>
      %c0_39 = arith.constant 0 : index
      %c0_40 = arith.constant 0 : index
      %63 = vector.load %arg3[%c0_39, %c0_40] : memref<1x128xf32, #tpu.memory_space<vmem>>, vector<1x128xf32>
      tpu.vector_store %arg3[%c0_39, %c0_40], %62 {strides = array<i32>} : memref<1x128xf32, #tpu.memory_space<vmem>>, vector<1x128xf32>,
    } else {
    }
    return
  }
  func.func @transform_0(%arg0: i32) -> (i32, i32, i32, i32) {
    %c0_i32 = arith.constant 0 : i32
    %c0_i32_0 = arith.constant 0 : i32
    %c0_i32_1 = arith.constant 0 : i32
    %c0_i32_2 = arith.constant 0 : i32
    return %arg0, %c0_i32, %c0_i32_0, %c0_i32_1 : i32, i32, i32, i32
  }
  func.func @transform_1(%arg0: i32) -> (i32, i32, i32, i32) {
    %c0_i32 = arith.constant 0 : i32
    %c0_i32_0 = arith.constant 0 : i32
    %c0_i32_1 = arith.constant 0 : i32
    %c0_i32_2 = arith.constant 0 : i32
    return %arg0, %c0_i32, %c0_i32_0, %c0_i32_1 : i32, i32, i32, i32
  }
  func.func @transform_2(%arg0: i32) -> (i32, i32) {
    %c0_i32 = arith.constant 0 : i32
    %c0_i32_0 = arith.constant 0 : i32
    %c0_i32_1 = arith.constant 0 : i32
    return %c0_i32, %c0_i32_0 : i32, i32
  }
}

</mosaic_0001>

<bundles_post_ra>
// kernel: tpu_custom_call.1
= control target key start
LH: loop header
LB: loop body
LE: loop exit
PB: predicated region body
PF: predicated region fallthrough
CT: control target
= control target key end

     0   :  { %7 = vsyncpa [#allocation5], 0  ;;  %s1191_s14 = smov [#allocation4]   ;;  %s3528_s0 = inlined_call_operand.vmem [shape: f32[2,3,57,81], index: 0, kind: input, shape index: {}]   ;;  %s3529_s1 = inlined_call_operand.vmem [shape: f32[2,3,57,81], index: 1, kind: input, shape index: {}]   ;;  %s3530_s2 = inlined_call_operand.hbm [shape: f32[1,128], index: 2, kind: output, shape index: {}]  }
   0x1   :  { %v19_v0 = vld [vmem:[%s3528_s0] sm:$0xff]  ;;  %v20_v1 = vld [vmem:[%s3528_s0 + $0x8] sm:$0xff]  ;;  %v21_v2 = vld [vmem:[%s3528_s0 + $0x10] sm:$0xff]  ;;  %s1050_s15 = sshll.u32 %s1191_s14, 4  ;;  %s1051_s15 = int_to_ptr.vmem [resolvable:$true] %s1050_s15 }
   0x2   :  { %v22_v3 = vld [vmem:[%s3528_s0 + $0x18] sm:$0xff]  ;;  %v23_v4 = vld [vmem:[%s3528_s0 + $0x20] sm:$0xff]  ;;  %v24_v6 = vld [vmem:[%s3528_s0 + $0x28] sm:$0xff]  ;;  %s1166_s16 = scalar_lea.vmem %s1051_s15, 16  ;;  %s1170_s17 = scalar_lea.vmem %s1051_s15, 32 }
   0x3   :  { %v1225_v5 = vld [vmem:[%s3529_s1] sm:$0xff]  ;;  %v25_v7 = vld [vmem:[%s3528_s0 + $0x30] sm:$0xff]  ;;  %v26_v8 = vld [vmem:[%s3528_s0 + $0x38] sm:$0x1]  ;;  %p1167_p0 = scmp.ne.s32.totalorder %s1051_s15, %s1166_s16  ;;  %p1171_p1 = scmp.lt.s32.totalorder %s1051_s15, %s1051_s15 }
   0x4   :  { %3650 = vst [vmem:[#allocation7_spill] sm:$0xff] %v1225_v5  ;;  %v27_v9 = vld [vmem:[%s3528_s0 + $0x40] sm:$0xff]  ;;  %v1242_v10 = vld [vmem:[%s3529_s1 + $0x8] sm:$0xff]  ;;  %v1247_v11 = vld [vmem:[%s3529_s1 + $0x10] sm:$0xff]  ;;  %v115_v24 = vsub.f32 %v19_v0, %v1225_v5  ;;  %vm355_vm0 = vcmp.ge.f32.partialorder %v1225_v5, 1.0  ;;  %p1172_p2 = scmp.lt.s32.totalorder %s1170_s17, %s1166_s16 }
   0x5   :  { %v28_v12 = vld [vmem:[%s3528_s0 + $0x48] sm:$0xff]  ;;  %v29_v13 = vld [vmem:[%s3528_s0 + $0x50] sm:$0xff]  ;;  %v30_v14 = vld [vmem:[%s3528_s0 + $0x58] sm:$0xff]  ;;  %v116_v31 = vsub.f32 %v20_v1, %v1242_v10  ;;  %v117_v38 = vsub.f32 %v21_v2, %v1247_v11  ;;  %vm356_vm1 = vcmp.ge.f32.partialorder %v1242_v10, 1.0  ;;  %vm357_vm2 = vcmp.ge.f32.partialorder %v1247_v11, 1.0 }
   0x6   :  { %v1261_v15 = vld [vmem:[%s3529_s1 + $0x18] sm:$0xff]  ;;  %v1266_v16 = vld [vmem:[%s3529_s1 + $0x20] sm:$0xff]  ;;  %v1271_v17 = vld [vmem:[%s3529_s1 + $0x28] sm:$0xff]  ;;  %v1419_v60 = vmul.f32 %v115_v24, %v115_v24  ;;  %p1173_p3 = por %p1172_p2, %p1171_p1 }
   0x7   :  { %3651 = vst [vmem:[#allocation8_spill] sm:$0xff] %v1261_v15  ;;  %3652 = vst [vmem:[#allocation9_spill] sm:$0xff] %v1271_v17  ;;  %v31_v18 = vld [vmem:[%s3528_s0 + $0x60] sm:$0xff]  ;;  %v32_v19 = vld [vmem:[%s3528_s0 + $0x68] sm:$0xff]  ;;  %v118_v39 = vsub.f32 %v22_v3, %v1261_v15  ;;  %v119_v40 = vsub.f32 %v23_v4, %v1266_v16  ;;  %v1375_v47 = vsub.f32 %v24_v6, %v1271_v17  ;;  %vm358_vm3 = vcmp.ge.f32.partialorder %v1261_v15, 1.0 }
   0x8   :  { %v33_v20 = vld [vmem:[%s3528_s0 + $0x70] sm:$0xff]  ;;  %v1290_v22 = vld [vmem:[%s3529_s1 + $0x38] sm:$0x1]  ;;  %v1295_v23 = vld [vmem:[%s3529_s1 + $0x40] sm:$0xff]  ;;  %3668 = vst [vmem:[#allocation25_spill] sm:$0xff] %v1419_v60  ;;  %vm359_vm4 = vcmp.ge.f32.partialorder %v1266_v16, 1.0  ;;  %p1174_p4 = pnand %p1173_p3, %p1167_p0 }
   0x9   :  { %v1285_v21 = vld [vmem:[%s3529_s1 + $0x30] sm:$0xff]  ;;  %3654 = vst [vmem:[#allocation11_spill] sm:$0xff] %v1290_v22  ;;  %3655 = vst [vmem:[#allocation12_spill] sm:$0xff] %v1295_v23  ;;  %v34_v25 = vld [vmem:[%s3528_s0 + $0x78] sm:$0x1]  ;;  %v1381_v49 = vsub.f32 %v26_v8, %v1290_v22  ;;  %v1384_v50 = vsub.f32 %v27_v9, %v1295_v23 }
   0xa   :  { %3653 = vst [vmem:[#allocation10_spill] sm:$0xff] %v1285_v21  ;;  %v35_v26 = vld [vmem:[%s3528_s0 + $0x80] sm:$0xff]  ;;  %v36_v27 = vld [vmem:[%s3528_s0 + $0x88] sm:$0xff]  ;;  %v1315_v29 = vld [vmem:[%s3529_s1 + $0x50] sm:$0xff]  ;;  %v1378_v48 = vsub.f32 %v25_v7, %v1285_v21  ;;  %v1454_v7 = vmul.f32 %v116_v31, %v116_v31  ;;  %v1489_v31 = vmul.f32 %v117_v38, %v117_v38 }
   0xb   :  { %v1310_v28 = vld [vmem:[%s3529_s1 + $0x48] sm:$0xff]  ;;  %3657 = vst [vmem:[#allocation14_spill] sm:$0xff] %v1315_v29  ;;  %v1320_v30 = vld [vmem:[%s3529_s1 + $0x58] sm:$0xff]  ;;  %v37_v32 = vld [vmem:[%s3528_s0 + $0x90] sm:$0xff]  ;;  %v1414_v58 = vsub.f32 %v29_v13, %v1315_v29 }
   0xc   :  { %3656 = vst [vmem:[#allocation13_spill] sm:$0xff] %v1310_v28  ;;  %3658 = vst [vmem:[#allocation15_spill] sm:$0xff] %v1320_v30  ;;  %v38_v33 = vld [vmem:[%s3528_s0 + $0x98] sm:$0xff]  ;;  %v39_v34 = vld [vmem:[%s3528_s0 + $0xa0] sm:$0xff]  ;;  %v1411_v57 = vsub.f32 %v28_v12, %v1310_v28  ;;  %v1417_v59 = vsub.f32 %v30_v14, %v1320_v30 }
   0xd   :  { %v1335_v35 = vld [vmem:[%s3529_s1 + $0x60] sm:$0xff]  ;;  %v1340_v36 = vld [vmem:[%s3529_s1 + $0x68] sm:$0xff]  ;;  %v1345_v37 = vld [vmem:[%s3529_s1 + $0x70] sm:$0xff]  ;;  %3672 = vst [vmem:[#allocation29_spill] sm:$0xff] %v1454_v7 }
   0xe   :  { %3659 = vst [vmem:[#allocation16_spill] sm:$0xff] %v1335_v35  ;;  %3660 = vst [vmem:[#allocation17_spill] sm:$0xff] %v1340_v36  ;;  %v40_v41 = vld [vmem:[%s3528_s0 + $0xa8] sm:$0xff]  ;;  %v41_v42 = vld [vmem:[%s3528_s0 + $0xb0] sm:$0xff]  ;;  %v1446_v3 = vsub.f32 %v31_v18, %v1335_v35  ;;  %v1449_v4 = vsub.f32 %v32_v19, %v1340_v36  ;;  %v1452_v6 = vsub.f32 %v33_v20, %v1345_v37 }
   0xf   :  { %3661 = vst [vmem:[#allocation18_spill] sm:$0xff] %v1345_v37  ;;  %v42_v43 = vld [vmem:[%s3528_s0 + $0xb8] sm:$0x1]  ;;  %v1367_v45 = vld [vmem:[%s3529_s1 + $0x80] sm:$0xff]  ;;  %v1372_v46 = vld [vmem:[%s3529_s1 + $0x88] sm:$0xff] }
  0x10   :  { %v1362_v44 = vld [vmem:[%s3529_s1 + $0x78] sm:$0x1]  ;;  %3663 = vst [vmem:[#allocation20_spill] sm:$0xff] %v1367_v45  ;;  %3664 = vst [vmem:[#allocation21_spill] sm:$0xff] %v1372_v46  ;;  %v43_v51 = vld [vmem:[%s3528_s0 + $0xc0] sm:$0xff]  ;;  %v1484_v20 = vsub.f32 %v35_v26, %v1367_v45  ;;  %v1487_v24 = vsub.f32 %v36_v27, %v1372_v46 }
  0x11   :  { %3662 = vst [vmem:[#allocation19_spill] sm:$0xff] %v1362_v44  ;;  %v44_v52 = vld [vmem:[%s3528_s0 + $0xc8] sm:$0xff]  ;;  %v45_v53 = vld [vmem:[%s3528_s0 + $0xd0] sm:$0xff]  ;;  %v1403_v55 = vld [vmem:[%s3529_s1 + $0x98] sm:$0xff]  ;;  %v1481_v19 = vsub.f32 %v34_v25, %v1362_v44  ;;  %v1524_v44 = vmul.f32 %v118_v39, %v118_v39 }
  0x12   :  { %v1398_v54 = vld [vmem:[%s3529_s1 + $0x90] sm:$0xff]  ;;  %3666 = vst [vmem:[#allocation23_spill] sm:$0xff] %v1403_v55  ;;  %v1408_v56 = vld [vmem:[%s3529_s1 + $0xa0] sm:$0xff]  ;;  %v46_v61 = vld [vmem:[%s3528_s0 + $0xd8] sm:$0xff]  ;;  %v1519_v46 = vsub.f32 %v38_v33, %v1403_v55 }
  0x13   :  { %3665 = vst [vmem:[#allocation22_spill] sm:$0xff] %v1398_v54  ;;  %3667 = vst [vmem:[#allocation24_spill] sm:$0xff] %v1408_v56  ;;  %v47_v62 = vld [vmem:[%s3528_s0 + $0xe0] sm:$0xff]  ;;  %v48_v63 = vld [vmem:[%s3528_s0 + $0xe8] sm:$0xff]  ;;  %v1522_v45 = vsub.f32 %v39_v34, %v1408_v56 }
  0x14   :  { %v1433_v0 = vld [vmem:[%s3529_s1 + $0xa8] sm:$0xff]  ;;  %v1438_v1 = vld [vmem:[%s3529_s1 + $0xb0] sm:$0xff]  ;;  %v1443_v2 = vld [vmem:[%s3529_s1 + $0xb8] sm:$0x1]  ;;  %3676 = vst [vmem:[#allocation33_spill] sm:$0xff] %v1489_v31  ;;  %v1516_v31 = vsub.f32 %v37_v32, %v1398_v54  ;;  %v1559_v54 = vmul.f32 %v119_v40, %v119_v40 }
  0x15   :  { %3669 = vst [vmem:[#allocation26_spill] sm:$0xff] %v1433_v0  ;;  %3670 = vst [vmem:[#allocation27_spill] sm:$0xff] %v1438_v1  ;;  %v49_v8 = vld [vmem:[%s3528_s0 + $0xf0] sm:$0xff]  ;;  %v50_v9 = vld [vmem:[%s3528_s0 + $0xf8] sm:$0x1]  ;;  %v1554_v56 = vsub.f32 %v41_v42, %v1438_v1  ;;  %v1557_v55 = vsub.f32 %v42_v43, %v1443_v2 }
  0x16   :  { %3671 = vst [vmem:[#allocation28_spill] sm:$0xff] %v1443_v2  ;;  %v51_v12 = vld [vmem:[%s3528_s0 + $0x100] sm:$0xff]  ;;  %v1473_v14 = vld [vmem:[%s3529_s1 + $0xc8] sm:$0xff]  ;;  %v1478_v18 = vld [vmem:[%s3529_s1 + $0xd0] sm:$0xff] }
  0x17   :  { %v1468_v13 = vld [vmem:[%s3529_s1 + $0xc0] sm:$0xff]  ;;  %3674 = vst [vmem:[#allocation31_spill] sm:$0xff] %v1473_v14  ;;  %3675 = vst [vmem:[#allocation32_spill] sm:$0xff] %v1478_v18  ;;  %v52_v7 = vld [vmem:[%s3528_s0 + $0x108] sm:$0xff]  ;;  %v140_v2 = vsub.f32 %v44_v52, %v1473_v14  ;;  %v141_v1 = vsub.f32 %v45_v53, %v1478_v18 }
  0x18   :  { %3673 = vst [vmem:[#allocation30_spill] sm:$0xff] %v1468_v13  ;;  %v53_v60 = vld [vmem:[%s3528_s0 + $0x110] sm:$0xff]  ;;  %v54_v25 = vld [vmem:[%s3528_s0 + $0x118] sm:$0xff]  ;;  %v1508_v27 = vld [vmem:[%s3529_s1 + $0xe0] sm:$0xff] }
  0x19   :  { %v1503_v26 = vld [vmem:[%s3529_s1 + $0xd8] sm:$0xff]  ;;  %3678 = vst [vmem:[#allocation35_spill] sm:$0xff] %v1508_v27  ;;  %v1513_v38 = vld [vmem:[%s3529_s1 + $0xe8] sm:$0xff]  ;;  %3680 = vst [vmem:[#allocation37_spill] sm:$0xff] %v1524_v44  ;;  %v1551_v44 = vsub.f32 %v40_v41, %v1433_v0  ;;  %v1590_v0 = vmul.f32 %v1375_v47, %v1375_v47  ;;  %v143_v18 = vsub.f32 %v47_v62, %v1508_v27 }
  0x1a   :  { %3677 = vst [vmem:[#allocation34_spill] sm:$0xff] %v1503_v26  ;;  %3679 = vst [vmem:[#allocation36_spill] sm:$0xff] %v1513_v38  ;;  %v55_v37 = vld [vmem:[%s3528_s0 + $0x120] sm:$0xff]  ;;  %v56_v36 = vld [vmem:[%s3528_s0 + $0x128] sm:$0xff]  ;;  %v144_v14 = vsub.f32 %v48_v63, %v1513_v38 }
  0x1b   :  { %v57_v32 = vld [vmem:[%s3528_s0 + $0x130] sm:$0xff]  ;;  %v1543_v34 = vld [vmem:[%s3529_s1 + $0xf8] sm:$0x1]  ;;  %v1548_v39 = vld [vmem:[%s3529_s1 + $0x100] sm:$0xff]  ;;  %3684 = vst [vmem:[#allocation41_spill] sm:$0xff] %v1559_v54  ;;  %v139_v54 = vsub.f32 %v43_v51, %v1468_v13  ;;  %v1621_v13 = vmul.f32 %v1378_v48, %v1378_v48 }
  0x1c   :  { %v1538_v33 = vld [vmem:[%s3529_s1 + $0xf0] sm:$0xff]  ;;  %3682 = vst [vmem:[#allocation39_spill] sm:$0xff] %v1543_v34  ;;  %3683 = vst [vmem:[#allocation40_spill] sm:$0xff] %v1548_v39  ;;  %v58_v35 = vld [vmem:[%s3528_s0 + $0x138] sm:$0x1]  ;;  %v146_v38 = vsub.f32 %v50_v9, %v1543_v34  ;;  %v147_v27 = vsub.f32 %v51_v12, %v1548_v39 }
  0x1d   :  { %3681 = vst [vmem:[#allocation38_spill] sm:$0xff] %v1538_v33  ;;  %v59_v30 = vld [vmem:[%s3528_s0 + $0x140] sm:$0xff]  ;;  %v60_v41 = vld [vmem:[%s3528_s0 + $0x148] sm:$0xff]  ;;  %v1578_v40 = vld [vmem:[%s3529_s1 + $0x110] sm:$0xff] }
  0x1e   :  { %v1573_v42 = vld [vmem:[%s3529_s1 + $0x108] sm:$0xff]  ;;  %3686 = vst [vmem:[#allocation43_spill] sm:$0xff] %v1578_v40  ;;  %v1583_v43 = vld [vmem:[%s3529_s1 + $0x118] sm:$0xff]  ;;  %3688 = vst [vmem:[#allocation45_spill] sm:$0xff] %v1590_v0  ;;  %v142_v0 = vsub.f32 %v46_v61, %v1503_v26  ;;  %v1652_v26 = vmul.f32 %v1381_v49, %v1381_v49  ;;  %v149_v49 = vsub.f32 %v53_v60, %v1578_v40 }
  0x1f   :  { %3685 = vst [vmem:[#allocation42_spill] sm:$0xff] %v1573_v42  ;;  %3687 = vst [vmem:[#allocation44_spill] sm:$0xff] %v1583_v43  ;;  %v61_v29 = vld [vmem:[%s3528_s0 + $0x150] sm:$0xff]  ;;  %v62_v28 = vld [vmem:[%s3528_s0 + $0x158] sm:$0xff]  ;;  %v148_v9 = vsub.f32 %v52_v7, %v1573_v42  ;;  %v150_v12 = vsub.f32 %v54_v25, %v1583_v43 }
  0x20   :  { %v63_v51 = vld [vmem:[%s3528_s0 + $0x160] sm:$0xff]  ;;  %v1609_v47 = vld [vmem:[%s3529_s1 + $0x128] sm:$0xff]  ;;  %v1614_v53 = vld [vmem:[%s3529_s1 + $0x130] sm:$0xff]  ;;  %3691 = vst [vmem:[#allocation48_spill] sm:$0xff] %v1621_v13  ;;  %v145_v13 = vsub.f32 %v49_v8, %v1538_v33  ;;  %v1703_v33 = vmul.f32 %v1414_v58, %v1414_v58  ;;  %v1717_v58 = vmul.f32 %v1446_v3, %v1446_v3  ;;  %v1741_v3 = vmul.f32 %v1516_v31, %v1516_v31 }
  0x21   :  { %v1604_v52 = vld [vmem:[%s3529_s1 + $0x120] sm:$0xff]  ;;  %3690 = vst [vmem:[#allocation47_spill] sm:$0xff] %v1614_v53  ;;  %v64_v23 = vld [vmem:[%s3528_s0 + $0x168] sm:$0xff]  ;;  %v65_v22 = vld [vmem:[%s3528_s0 + $0x170] sm:$0xff]  ;;  %v153_v25 = vsub.f32 %v57_v32, %v1614_v53  ;;  %v1763_v31 = vmul.f32 %v139_v54, %v139_v54  ;;  %v1783_v54 = vmul.f32 %v149_v49, %v149_v49  ;;  %vm392_vm7 = vcmp.ge.f32.partialorder %v1609_v47, 1.0 }
  0x22   :  { %3689 = vst [vmem:[#allocation46_spill] sm:$0xff] %v1604_v52  ;;  %v66_v61 = vld [vmem:[%s3528_s0 + $0x178] sm:$0x1]  ;;  %v1640_v48 = vld [vmem:[%s3529_s1 + $0x140] sm:$0xff]  ;;  %v1645_v63 = vld [vmem:[%s3529_s1 + $0x148] sm:$0xff]  ;;  %v151_v7 = vsub.f32 %v55_v37, %v1604_v52  ;;  %vm391_vm6 = vcmp.ge.f32.partialorder %v1604_v52, 1.0 }
  0x23   :  { %v1635_v62 = vld [vmem:[%s3529_s1 + $0x138] sm:$0x1]  ;;  %3693 = vst [vmem:[#allocation50_spill] sm:$0xff] %v1652_v26  ;;  %v1657_v21 = vld [vmem:[%s3529_s1 + $0x150] sm:$0xff]  ;;  %v1667_v8 = vld [vmem:[%s3529_s1 + $0x160] sm:$0xff]  ;;  %v1674_v26 = vmul.f32 %v1384_v50, %v1384_v50  ;;  %v152_v50 = vsub.f32 %v56_v36, %v1609_v47  ;;  %v155_v40 = vsub.f32 %v59_v30, %v1640_v48  ;;  %v156_v42 = vsub.f32 %v60_v41, %v1645_v63 }
  0x24   :  { %3692 = vst [vmem:[#allocation49_spill] sm:$0xff] %v1635_v62  ;;  %v1662_v17 = vld [vmem:[%s3529_s1 + $0x158] sm:$0xff]  ;;  %3695 = vst [vmem:[#allocation52_spill] sm:$0xff] %v1667_v8  ;;  %v1679_v39 = vld [vmem:[%s3529_s1 + $0x168] sm:$0xff]  ;;  %v154_v43 = vsub.f32 %v58_v35, %v1635_v62  ;;  %v157_v37 = vsub.f32 %v61_v29, %v1657_v21  ;;  %v159_v32 = vsub.f32 %v63_v51, %v1667_v8  ;;  %vm397_vm12 = vcmp.ge.f32.partialorder %v1657_v21, 1.0 }
  0x25   :  { %3694 = vst [vmem:[#allocation51_spill] sm:$0xff] %v1662_v17  ;;  %3696 = vst [vmem:[#allocation53_spill] sm:$0xff] %v1674_v26  ;;  %v1684_v34 = vld [vmem:[%s3529_s1 + $0x170] sm:$0xff]  ;;  %v1689_v60 = vld [vmem:[%s3529_s1 + $0x178] sm:$0x1]  ;;  %v1696_v26 = vmul.f32 %v1411_v57, %v1411_v57  ;;  %v158_v36 = vsub.f32 %v62_v28, %v1662_v17  ;;  %v1710_v57 = vmul.f32 %v1417_v59, %v1417_v59  ;;  %vm398_vm13 = vcmp.ge.f32.partialorder %v1662_v17, 1.0 }
  0x26   :  { %3697 = vst [vmem:[#allocation54_spill] sm:$0xff] %v1679_v39  ;;  %3698 = vst [vmem:[#allocation55_spill] sm:$0xff] %v1684_v34  ;;  %v160_v35 = vsub.f32 %v64_v23, %v1679_v39  ;;  %v161_v30 = vsub.f32 %v65_v22, %v1684_v34  ;;  %v162_v41 = vsub.f32 %v66_v61, %v1689_v60  ;;  %vm399_vm14 = vcmp.ge.f32.partialorder %v1667_v8, 1.0 }
  0x27   :  { %3699 = vst [vmem:[#allocation56_spill] sm:$0xff] %v1689_v60  ;;  %3700 = vst [vmem:[#allocation57_spill] sm:$0xff] %v1696_v26  ;;  %v1721_v29 = vmul.f32 %v1449_v4, %v1449_v4  ;;  %v1725_v28 = vmul.f32 %v1452_v6, %v1452_v6  ;;  %v1729_v59 = vmul.f32 %v1481_v19, %v1481_v19  ;;  %vm400_vm9 = vcmp.ge.f32.partialorder %v1679_v39, 1.0 }
  0x28   :  { %3701 = vst [vmem:[#allocation58_spill] sm:$0xff] %v1703_v33  ;;  %3702 = vst [vmem:[#allocation59_spill] sm:$0xff] %v1710_v57  ;;  %v1733_v22 = vmul.f32 %v1484_v20, %v1484_v20  ;;  %v1737_v23 = vmul.f32 %v1487_v24, %v1487_v24  ;;  %v1745_v4 = vmul.f32 %v1519_v46, %v1519_v46  ;;  %vm401_vm10 = vcmp.ge.f32.partialorder %v1684_v34, 1.0 }
  0x29   :  { %3703 = vst [vmem:[#allocation60_spill] sm:$0xff] %v1717_v58  ;;  %3704 = vst [vmem:[#allocation61_spill] sm:$0xff] %v1721_v29  ;;  %v1749_v6 = vmul.f32 %v1522_v45, %v1522_v45  ;;  %v1753_v19 = vmul.f32 %v1551_v44, %v1551_v44  ;;  %v1757_v20 = vmul.f32 %v1554_v56, %v1554_v56 }
  0x2a   :  { %3705 = vst [vmem:[#allocation62_spill] sm:$0xff] %v1725_v28  ;;  %3706 = vst [vmem:[#allocation63_spill] sm:$0xff] %v1729_v59  ;;  %v1761_v24 = vmul.f32 %v1557_v55, %v1557_v55  ;;  %v1765_v46 = vmul.f32 %v140_v2, %v140_v2  ;;  %v1767_v51 = vmul.f32 %v141_v1, %v141_v1 }
  0x2b   :  { %3707 = vst [vmem:[#allocation64_spill] sm:$0xff] %v1733_v22  ;;  %3708 = vst [vmem:[#allocation65_spill] sm:$0xff] %v1737_v23  ;;  %v1769_v45 = vmul.f32 %v142_v0, %v142_v0  ;;  %v1771_v61 = vmul.f32 %v143_v18, %v143_v18  ;;  %v1773_v44 = vmul.f32 %v144_v14, %v144_v14 }
  0x2c   :  { %3709 = vst [vmem:[#allocation66_spill] sm:$0xff] %v1741_v3  ;;  %3710 = vst [vmem:[#allocation67_spill] sm:$0xff] %v1745_v4  ;;  %v1777_v56 = vmul.f32 %v146_v38, %v146_v38  ;;  %v1781_v55 = vmul.f32 %v148_v9, %v148_v9  ;;  %v1785_v2 = vmul.f32 %v150_v12, %v150_v12 }
  0x2d   :  { %3711 = vst [vmem:[#allocation68_spill] sm:$0xff] %v1749_v6  ;;  %3712 = vst [vmem:[#allocation69_spill] sm:$0xff] %v1753_v19  ;;  %v1775_v19 = vmul.f32 %v145_v13, %v145_v13  ;;  %v1787_v1 = vmul.f32 %v151_v7, %v151_v7  ;;  %v1789_v0 = vmul.f32 %v152_v50, %v152_v50 }
  0x2e   :  { %3713 = vst [vmem:[#allocation70_spill] sm:$0xff] %v1757_v20  ;;  %3714 = vst [vmem:[#allocation71_spill] sm:$0xff] %v1761_v24  ;;  %v1779_v20 = vmul.f32 %v147_v27, %v147_v27  ;;  %v1791_v18 = vmul.f32 %v153_v25, %v153_v25  ;;  %v1793_v14 = vmul.f32 %v154_v43, %v154_v43  ;;  %v3741_v43 = vld [vmem:[#allocation11_spill] sm:$0xff]  ;;  %v3742_v25 = vld [vmem:[#allocation12_spill] sm:$0xff] }
  0x2f   :  { %3715 = vst [vmem:[#allocation72_spill] sm:$0xff] %v1763_v31  ;;  %3716 = vst [vmem:[#allocation73_spill] sm:$0xff] %v1765_v46  ;;  %v1795_v13 = vmul.f32 %v155_v40, %v155_v40  ;;  %v1797_v38 = vmul.f32 %v156_v42, %v156_v42  ;;  %v1799_v27 = vmul.f32 %v157_v37, %v157_v37  ;;  %v3739_v42 = vld [vmem:[#allocation9_spill] sm:$0xff]  ;;  %v3740_v40 = vld [vmem:[#allocation10_spill] sm:$0xff] }
  0x30   :  { %3717 = vst [vmem:[#allocation74_spill] sm:$0xff] %v1767_v51  ;;  %3718 = vst [vmem:[#allocation75_spill] sm:$0xff] %v1769_v45  ;;  %v1801_v9 = vmul.f32 %v158_v36, %v158_v36  ;;  %v1803_v49 = vmul.f32 %v159_v32, %v159_v32  ;;  %v1805_v12 = vmul.f32 %v160_v35, %v160_v35  ;;  %vm360_vm5 = vcmp.ge.f32.partialorder %v3739_v42, 1.0  ;;  %v3743_v37 = vld [vmem:[#allocation13_spill] sm:$0xff]  ;;  %v3744_v36 = vld [vmem:[#allocation14_spill] sm:$0xff] }
  0x31   :  { %3719 = vst [vmem:[#allocation76_spill] sm:$0xff] %v1771_v61  ;;  %3720 = vst [vmem:[#allocation77_spill] sm:$0xff] %v1773_v44  ;;  %v1807_v7 = vmul.f32 %v161_v30, %v161_v30  ;;  %v1809_v50 = vmul.f32 %v162_v41, %v162_v41  ;;  %v3745_v32 = vld [vmem:[#allocation15_spill] sm:$0xff]  ;;  %v3746_v35 = vld [vmem:[#allocation16_spill] sm:$0xff]  ;;  %v1188_v51 = vmov 1.0  }
  0x32   :  { %3721 = vst [vmem:[#allocation78_spill] sm:$0xff] %v1775_v19  ;;  %3722 = vst [vmem:[#allocation79_spill] sm:$0xff] %v1777_v56  ;;  %v3747_v30 = vld [vmem:[#allocation17_spill] sm:$0xff]  ;;  %v3748_v41 = vld [vmem:[#allocation18_spill] sm:$0xff]  ;;  %v1859_v46 = vsel %vm355_vm0, 2.0, %v1188_v51  ;;  %v1868_v31 = vsel %vm356_vm1, 2.0, %v1188_v51 }
  0x33   :  { %3723 = vst [vmem:[#allocation80_spill] sm:$0xff] %v1779_v20  ;;  %3724 = vst [vmem:[#allocation81_spill] sm:$0xff] %v1781_v55  ;;  %v3763_v55 = vld [vmem:[#allocation36_spill] sm:$0xff]  ;;  %v3764_v20 = vld [vmem:[#allocation38_spill] sm:$0xff]  ;;  %v1873_v24 = vsel %vm357_vm2, 2.0, %v1188_v51  ;;  %v1878_v6 = vsel %vm358_vm3, 2.0, %v1188_v51 }
  0x34   :  { %3725 = vst [vmem:[#allocation82_spill] sm:$0xff] %v1783_v54  ;;  %3726 = vst [vmem:[#allocation83_spill] sm:$0xff] %v1785_v2  ;;  %v3761_v2 = vld [vmem:[#allocation34_spill] sm:$0xff]  ;;  %v3762_v54 = vld [vmem:[#allocation35_spill] sm:$0xff]  ;;  %v1883_v4 = vsel %vm359_vm4, 2.0, %v1188_v51  ;;  %vm308_vm0 = vcmp.ge.f32.partialorder %v1242_v10, 10.0 }
  0x35   :  { %3727 = vst [vmem:[#allocation84_spill] sm:$0xff] %v1787_v1  ;;  %3728 = vst [vmem:[#allocation85_spill] sm:$0xff] %v1789_v0  ;;  %v3759_v0 = vld [vmem:[#allocation31_spill] sm:$0xff]  ;;  %v3760_v1 = vld [vmem:[#allocation32_spill] sm:$0xff]  ;;  %v1892_v3 = vsel %vm360_vm5, 2.0, %v1188_v51  ;;  %vm3770_vm2 = vcmp.ge.f32.partialorder %v3740_v40, 1.0 }
  0x36   :  { %3729 = vst [vmem:[#allocation86_spill] sm:$0xff] %v1791_v18  ;;  %3730 = vst [vmem:[#allocation87_spill] sm:$0xff] %v1793_v14  ;;  %v3757_v14 = vld [vmem:[#allocation28_spill] sm:$0xff]  ;;  %v3758_v18 = vld [vmem:[#allocation30_spill] sm:$0xff]  ;;  %v1897_v23 = vsel %vm3770_vm2, 2.0, %v1188_v51  ;;  %vm3771_vm3 = vcmp.ge.f32.partialorder %v3741_v43, 1.0 }
  0x37   :  { %3731 = vst [vmem:[#allocation88_spill] sm:$0xff] %v1795_v13  ;;  %3732 = vst [vmem:[#allocation89_spill] sm:$0xff] %v1797_v38  ;;  %v3755_v38 = vld [vmem:[#allocation26_spill] sm:$0xff]  ;;  %v3756_v13 = vld [vmem:[#allocation27_spill] sm:$0xff]  ;;  %v1902_v22 = vsel %vm3771_vm3, 2.0, %v1188_v51  ;;  %vm3772_vm4 = vcmp.ge.f32.partialorder %v3742_v25, 1.0 }
  0x38   :  { %3733 = vst [vmem:[#allocation90_spill] sm:$0xff] %v1799_v27  ;;  %3734 = vst [vmem:[#allocation91_spill] sm:$0xff] %v1801_v9  ;;  %v3753_v9 = vld [vmem:[#allocation23_spill] sm:$0xff]  ;;  %v3754_v27 = vld [vmem:[#allocation24_spill] sm:$0xff]  ;;  %v1907_v59 = vsel %vm3772_vm4, 2.0, %v1188_v51  ;;  %vm3773_vm2 = vcmp.ge.f32.partialorder %v3743_v37, 1.0 }
  0x39   :  { %3735 = vst [vmem:[#allocation92_spill] sm:$0xff] %v1803_v49  ;;  %3736 = vst [vmem:[#allocation93_spill] sm:$0xff] %v1805_v12  ;;  %v3751_v12 = vld [vmem:[#allocation21_spill] sm:$0xff]  ;;  %v3752_v49 = vld [vmem:[#allocation22_spill] sm:$0xff]  ;;  %v1916_v28 = vsel %vm3773_vm2, 2.0, %v1188_v51  ;;  %vm3774_vm3 = vcmp.ge.f32.partialorder %v3744_v36, 1.0 }
  0x3a   :  { %3737 = vst [vmem:[#allocation94_spill] sm:$0xff] %v1807_v7  ;;  %3738 = vst [vmem:[#allocation95_spill] sm:$0xff] %v1809_v50  ;;  %v3749_v50 = vld [vmem:[#allocation19_spill] sm:$0xff]  ;;  %v3750_v7 = vld [vmem:[#allocation20_spill] sm:$0xff]  ;;  %v1921_v29 = vsel %vm3774_vm3, 2.0, %v1188_v51  ;;  %vm3775_vm4 = vcmp.ge.f32.partialorder %v3745_v32, 1.0 }
  0x3b   :  { %v3765_v56 = vld [vmem:[#allocation39_spill] sm:$0xff]  ;;  %v3766_v19 = vld [vmem:[#allocation40_spill] sm:$0xff]  ;;  %v3767_v44 = vld [vmem:[#allocation42_spill] sm:$0xff]  ;;  %v1926_v58 = vsel %vm3775_vm4, 2.0, %v1188_v51  ;;  %vm3776_vm8 = vcmp.ge.f32.partialorder %v3746_v35, 1.0  ;;  %vm3778_vm3 = vcmp.ge.f32.partialorder %v3747_v30, 1.0 }
  0x3c   :  { %v3768_v61 = vld [vmem:[#allocation43_spill] sm:$0xff]  ;;  %v3769_v45 = vld [vmem:[#allocation44_spill] sm:$0xff]  ;;  %v1931_v57 = vsel %vm3776_vm8, 2.0, %v1188_v51  ;;  %v1940_v33 = vsel %vm3778_vm3, 2.0, %v1188_v51  ;;  %vm3779_vm4 = vcmp.ge.f32.partialorder %v3748_v41, 1.0  ;;  %vm3781_vm8 = vcmp.ge.f32.partialorder %v3749_v50, 1.0 }
  0x3d   :  { %vm390_vm15 = vcmp.ge.f32.partialorder %v3769_v45, 1.0  ;;  %3777 = vst [vmem:[#allocation9_spill] sm:$0xff] %v1931_v57  ;;  %v1945_v26 = vsel %vm3779_vm4, 2.0, %v1188_v51  ;;  %v1950_v57 = vsel %vm3781_vm8, 2.0, %v1188_v51  ;;  %vm3783_vm5 = vcmp.ge.f32.partialorder %v3750_v7, 1.0 }
  0x3e   :  { %3780 = vst [vmem:[#allocation12_spill] sm:$0xff] %v1945_v26  ;;  %3782 = vst [vmem:[#allocation13_spill] sm:$0xff] %v1950_v57  ;;  %v1955_v32 = vsel %vm3783_vm5, 2.0, %v1188_v51  ;;  %vm3785_vm4 = vcmp.ge.f32.partialorder %v3751_v12, 1.0  ;;  %vm3786_vm8 = vcmp.ge.f32.partialorder %v3752_v49, 1.0  ;;  %vm3788_vm5 = vcmp.ge.f32.partialorder %v3753_v9, 1.0 }
  0x3f   :  { %3784 = vst [vmem:[#allocation16_spill] sm:$0xff] %v1955_v32  ;;  %v1964_v26 = vsel %vm3785_vm4, 2.0, %v1188_v51  ;;  %v1969_v57 = vsel %vm3786_vm8, 2.0, %v1188_v51  ;;  %v1974_v32 = vsel %vm3788_vm5, 2.0, %v1188_v51  ;;  %vm3790_vm2 = vcmp.ge.f32.partialorder %v3754_v27, 1.0 }
  0x40   :  { %3787 = vst [vmem:[#allocation17_spill] sm:$0xff] %v1969_v57  ;;  %3789 = vst [vmem:[#allocation20_spill] sm:$0xff] %v1974_v32  ;;  %v1979_v50 = vsel %vm3790_vm2, 2.0, %v1188_v51  ;;  %vm3792_vm8 = vcmp.ge.f32.partialorder %v3755_v38, 1.0  ;;  %vm3793_vm5 = vcmp.ge.f32.partialorder %v3756_v13, 1.0  ;;  %vm3795_vm2 = vcmp.ge.f32.partialorder %v3757_v14, 1.0 }
  0x41   :  { %3791 = vst [vmem:[#allocation21_spill] sm:$0xff] %v1979_v50  ;;  %v1988_v57 = vsel %vm3792_vm8, 2.0, %v1188_v51  ;;  %v1993_v32 = vsel %vm3793_vm5, 2.0, %v1188_v51  ;;  %v1998_v50 = vsel %vm3795_vm2, 2.0, %v1188_v51  ;;  %vm3797_vm3 = vcmp.ge.f32.partialorder %v3758_v18, 1.0 }
  0x42   :  { %3794 = vst [vmem:[#allocation24_spill] sm:$0xff] %v1993_v32  ;;  %3796 = vst [vmem:[#allocation26_spill] sm:$0xff] %v1998_v50  ;;  %v2003_v9 = vsel %vm3797_vm3, 2.0, %v1188_v51  ;;  %vm3799_vm5 = vcmp.ge.f32.partialorder %v3759_v0, 1.0  ;;  %vm3800_vm2 = vcmp.ge.f32.partialorder %v3760_v1, 1.0  ;;  %vm3802_vm3 = vcmp.ge.f32.partialorder %v3761_v2, 1.0 }
  0x43   :  { %3798 = vst [vmem:[#allocation30_spill] sm:$0xff] %v2003_v9  ;;  %v2012_v32 = vsel %vm3799_vm5, 2.0, %v1188_v51  ;;  %v2017_v50 = vsel %vm3800_vm2, 2.0, %v1188_v51  ;;  %v2022_v9 = vsel %vm3802_vm3, 2.0, %v1188_v51  ;;  %vm3804_vm4 = vcmp.ge.f32.partialorder %v3762_v54, 1.0 }
  0x44   :  { %3801 = vst [vmem:[#allocation31_spill] sm:$0xff] %v2017_v50  ;;  %3803 = vst [vmem:[#allocation35_spill] sm:$0xff] %v2022_v9  ;;  %v2027_v14 = vsel %vm3804_vm4, 2.0, %v1188_v51  ;;  %vm3806_vm2 = vcmp.ge.f32.partialorder %v3763_v55, 1.0  ;;  %vm3807_vm3 = vcmp.ge.f32.partialorder %v3764_v20, 1.0  ;;  %vm3809_vm4 = vcmp.ge.f32.partialorder %v3765_v56, 1.0 }
  0x45   :  { %3805 = vst [vmem:[#allocation36_spill] sm:$0xff] %v2027_v14  ;;  %v2036_v50 = vsel %vm3806_vm2, 2.0, %v1188_v51  ;;  %v2041_v9 = vsel %vm3807_vm3, 2.0, %v1188_v51  ;;  %v2046_v14 = vsel %vm3809_vm4, 2.0, %v1188_v51  ;;  %vm3811_vm8 = vcmp.ge.f32.partialorder %v3766_v19, 1.0 }
  0x46   :  { %3808 = vst [vmem:[#allocation40_spill] sm:$0xff] %v2041_v9  ;;  %3810 = vst [vmem:[#allocation42_spill] sm:$0xff] %v2046_v14  ;;  %v2051_v2 = vsel %vm3811_vm8, 2.0, %v1188_v51  ;;  %vm336_vm11 = vcmp.ge.f32.partialorder %v3763_v55, 10.0  ;;  %vm337_vm2 = vcmp.ge.f32.partialorder %v3764_v20, 10.0  ;;  %vm3813_vm3 = vcmp.ge.f32.partialorder %v3767_v44, 1.0 }
  0x47   :  { %3812 = vst [vmem:[#allocation96_spill] sm:$0xff] %v2051_v2  ;;  %v2060_v9 = vsel %vm3813_vm3, 2.0, %v1188_v51  ;;  %vm3814_vm4 = vcmp.ge.f32.partialorder %v3768_v61, 1.0  ;;  %v2070_v2 = vsel %vm390_vm15, 2.0, %v1188_v51  ;;  %v2075_v56 = vsel %vm391_vm6, 2.0, %v1188_v51 }
  0x48   :  { %v2065_v14 = vsel %vm3814_vm4, 2.0, %v1188_v51  ;;  %3816 = vst [vmem:[#allocation98_spill] sm:$0xff] %v2070_v2  ;;  %3817 = vst [vmem:[#allocation99_spill] sm:$0xff] %v2075_v56  ;;  %vm340_vm8 = vcmp.ge.f32.partialorder %v3767_v44, 10.0  ;;  %vm3818_vm15 = vcmp.ge.f32.partialorder %v1614_v53, 1.0  ;;  %vm3820_vm6 = vcmp.ge.f32.partialorder %v1635_v62, 1.0 }
  0x49   :  { %3815 = vst [vmem:[#allocation97_spill] sm:$0xff] %v2065_v14  ;;  %v2084_v14 = vsel %vm392_vm7, 2.0, %v1188_v51  ;;  %v2089_v2 = vsel %vm3818_vm15, 2.0, %v1188_v51  ;;  %v2094_v56 = vsel %vm3820_vm6, 2.0, %v1188_v51  ;;  %vm3822_vm4 = vcmp.ge.f32.partialorder %v1640_v48, 1.0 }
  0x4a   :  { %3819 = vst [vmem:[#allocation100_spill] sm:$0xff] %v2089_v2  ;;  %3821 = vst [vmem:[#allocation101_spill] sm:$0xff] %v2094_v56  ;;  %v2099_v45 = vsel %vm3822_vm4, 2.0, %v1188_v51  ;;  %vm344_vm5 = vcmp.ge.f32.partialorder %v1609_v47, 10.0  ;;  %vm345_vm7 = vcmp.ge.f32.partialorder %v1614_v53, 10.0  ;;  %vm346_vm1 = vcmp.ge.f32.partialorder %v1635_v62, 10.0 }
  0x4b   :  { %3823 = vst [vmem:[#allocation102_spill] sm:$0xff] %v2099_v45  ;;  %vm3824_vm15 = vcmp.ge.f32.partialorder %v1645_v63, 1.0  ;;  %v2113_v56 = vsel %vm397_vm12, 2.0, %v1188_v51  ;;  %v2118_v45 = vsel %vm398_vm13, 2.0, %v1188_v51  ;;  %v2123_v62 = vsel %vm399_vm14, 2.0, %v1188_v51 }
  0x4c   :  { %v2108_v2 = vsel %vm3824_vm15, 2.0, %v1188_v51  ;;  %3825 = vst [vmem:[#allocation103_spill] sm:$0xff] %v2113_v56  ;;  %3826 = vst [vmem:[#allocation104_spill] sm:$0xff] %v2118_v45  ;;  %vm348_vm6 = vcmp.ge.f32.partialorder %v1645_v63, 10.0  ;;  %vm349_vm4 = vcmp.ge.f32.partialorder %v1657_v21, 10.0  ;;  %v2132_v56 = vsel %vm400_vm9, 2.0, %v1188_v51 }
  0x4d   :  { %3827 = vst [vmem:[#allocation105_spill] sm:$0xff] %v2123_v62  ;;  %v2137_v45 = vsel %vm401_vm10, 2.0, %v1188_v51  ;;  %vm3829_vm12 = vcmp.ge.f32.partialorder %v1689_v60, 1.0  ;;  %vm3830_vm13 = vcmp.ge.f32.partialorder %v1225_v5, 10.0  ;;  %vm352_vm9 = vcmp.ge.f32.partialorder %v1679_v39, 10.0 }
  0x4e   :  { %3828 = vst [vmem:[#allocation106_spill] sm:$0xff] %v2137_v45  ;;  %v2142_v62 = vsel %vm3829_vm12, 2.0, %v1188_v51  ;;  %v2147_v17 = vsel %vm3830_vm13, 5.0, %v1859_v46  ;;  %v2156_v45 = vsel %vm308_vm0, 5.0, %v1868_v31  ;;  %vm3831_vm10 = vcmp.ge.f32.partialorder %v1247_v11, 10.0 }
  0x4f   :  { %v2161_v51 = vsel %vm3831_vm10, 5.0, %v1873_v24  ;;  %vm3832_vm12 = vcmp.ge.f32.partialorder %v1261_v15, 10.0  ;;  %vm3833_vm13 = vcmp.ge.f32.partialorder %v1266_v16, 10.0  ;;  %vm3834_vm10 = vcmp.ge.f32.partialorder %v3739_v42, 10.0  ;;  %v3901_v20 = vld [vmem:[#allocation99_spill] sm:$0xff] }
  0x50   :  { %v2166_v46 = vsel %vm3832_vm12, 5.0, %v1878_v6  ;;  %v2171_v5 = vsel %vm3833_vm13, 5.0, %v1883_v4  ;;  %v2180_v24 = vsel %vm3834_vm10, 5.0, %v1892_v3  ;;  %vm3835_vm12 = vcmp.ge.f32.partialorder %v3740_v40, 10.0 }
  0x51   :  { %v2185_v6 = vsel %vm3835_vm12, 5.0, %v1897_v23  ;;  %vm3836_vm13 = vcmp.ge.f32.partialorder %v3741_v43, 10.0  ;;  %vm3837_vm15 = vcmp.ge.f32.partialorder %v3742_v25, 10.0  ;;  %vm3839_vm12 = vcmp.ge.f32.partialorder %v3743_v37, 10.0 }
  0x52   :  { %v2190_v4 = vsel %vm3836_vm13, 5.0, %v1902_v22  ;;  %v2195_v31 = vsel %vm3837_vm15, 5.0, %v1907_v59  ;;  %v2204_v23 = vsel %vm3839_vm12, 5.0, %v1916_v28  ;;  %vm3840_vm13 = vcmp.ge.f32.partialorder %v3744_v36, 10.0  ;;  %v3841_v59 = vld [vmem:[#allocation15_spill] sm:$0xff]  ;;  %v3854_v36 = vld [vmem:[#allocation16_spill] sm:$0xff] }
  0x53   :  { %3838 = vst [vmem:[#allocation107_spill] sm:$0xff] %v2195_v31  ;;  %v2209_v22 = vsel %vm3840_vm13, 5.0, %v1921_v29  ;;  %vm3842_vm15 = vcmp.ge.f32.partialorder %v3841_v59, 10.0  ;;  %v3844_v31 = vld [vmem:[#allocation9_spill] sm:$0xff]  ;;  %vm3845_vm0 = vcmp.ge.f32.partialorder %v3746_v35, 10.0  ;;  %vm3847_vm13 = vcmp.ge.f32.partialorder %v3747_v30, 10.0 }
  0x54   :  { %v2214_v3 = vsel %vm3842_vm15, 5.0, %v1926_v58  ;;  %v2219_v43 = vsel %vm3845_vm0, 5.0, %v3844_v31  ;;  %v2228_v29 = vsel %vm3847_vm13, 5.0, %v1940_v33  ;;  %v3848_v58 = vld [vmem:[#allocation12_spill] sm:$0xff]  ;;  %vm3849_vm15 = vcmp.ge.f32.partialorder %v3748_v41, 10.0  ;;  %v3850_v31 = vld [vmem:[#allocation13_spill] sm:$0xff] }
  0x55   :  { %3843 = vst [vmem:[#allocation108_spill] sm:$0xff] %v2214_v3  ;;  %3846 = vst [vmem:[#allocation9_spill] sm:$0xff] %v2219_v43  ;;  %v2233_v28 = vsel %vm3849_vm15, 5.0, %v3848_v58  ;;  %v3851_v43 = vld [vmem:[#allocation19_spill] sm:$0xff]  ;;  %vm3855_vm10 = vcmp.ge.f32.partialorder %v3750_v7, 10.0  ;;  %vm3857_vm15 = vcmp.ge.f32.partialorder %v3751_v12, 10.0 }
  0x56   :  { %vm3852_vm0 = vcmp.ge.f32.partialorder %v3851_v43, 10.0  ;;  %v2243_v59 = vsel %vm3855_vm10, 5.0, %v3854_v36  ;;  %v2252_v33 = vsel %vm3857_vm15, 5.0, %v1964_v26  ;;  %v3858_v58 = vld [vmem:[#allocation17_spill] sm:$0xff]  ;;  %v3860_v36 = vld [vmem:[#allocation20_spill] sm:$0xff]  ;;  %vm3865_vm12 = vcmp.ge.f32.partialorder %v3754_v27, 10.0 }
  0x57   :  { %v2238_v3 = vsel %vm3852_vm0, 5.0, %v3850_v31  ;;  %3856 = vst [vmem:[#allocation13_spill] sm:$0xff] %v2243_v59  ;;  %vm3859_vm0 = vcmp.ge.f32.partialorder %v3752_v49, 10.0  ;;  %v3861_v59 = vld [vmem:[#allocation23_spill] sm:$0xff]  ;;  %v3864_v41 = vld [vmem:[#allocation21_spill] sm:$0xff]  ;;  %v3874_v49 = vld [vmem:[#allocation30_spill] sm:$0xff] }
  0x58   :  { %3853 = vst [vmem:[#allocation12_spill] sm:$0xff] %v2238_v3  ;;  %v2257_v31 = vsel %vm3859_vm0, 5.0, %v3858_v58  ;;  %vm3862_vm10 = vcmp.ge.f32.partialorder %v3861_v59, 10.0  ;;  %v2267_v43 = vsel %vm3865_vm12, 5.0, %v3864_v41  ;;  %vm3867_vm0 = vcmp.ge.f32.partialorder %v3755_v38, 10.0  ;;  %v3868_v58 = vld [vmem:[#allocation24_spill] sm:$0xff] }
  0x59   :  { %v2262_v3 = vsel %vm3862_vm10, 5.0, %v3860_v36  ;;  %3866 = vst [vmem:[#allocation17_spill] sm:$0xff] %v2267_v43  ;;  %v2276_v26 = vsel %vm3867_vm0, 5.0, %v1988_v57  ;;  %vm3869_vm10 = vcmp.ge.f32.partialorder %v3756_v13, 10.0  ;;  %v3870_v41 = vld [vmem:[#allocation26_spill] sm:$0xff]  ;;  %v3871_v43 = vld [vmem:[#allocation28_spill] sm:$0xff] }
  0x5a   :  { %3863 = vst [vmem:[#allocation16_spill] sm:$0xff] %v2262_v3  ;;  %v2281_v36 = vsel %vm3869_vm10, 5.0, %v3868_v58  ;;  %vm3872_vm12 = vcmp.ge.f32.partialorder %v3871_v43, 10.0  ;;  %vm3875_vm13 = vcmp.ge.f32.partialorder %v3758_v18, 10.0  ;;  %vm3877_vm10 = vcmp.ge.f32.partialorder %v3759_v0, 10.0  ;;  %v3878_v58 = vld [vmem:[#allocation31_spill] sm:$0xff] }
  0x5b   :  { %v2286_v3 = vsel %vm3872_vm12, 5.0, %v3870_v41  ;;  %v2291_v59 = vsel %vm3875_vm13, 5.0, %v3874_v49  ;;  %v2300_v57 = vsel %vm3877_vm10, 5.0, %v2012_v32  ;;  %vm3879_vm12 = vcmp.ge.f32.partialorder %v3760_v1, 10.0  ;;  %v3880_v49 = vld [vmem:[#allocation35_spill] sm:$0xff]  ;;  %v3884_v13 = vld [vmem:[#allocation36_spill] sm:$0xff] }
  0x5c   :  { %3873 = vst [vmem:[#allocation20_spill] sm:$0xff] %v2286_v3  ;;  %3876 = vst [vmem:[#allocation21_spill] sm:$0xff] %v2291_v59  ;;  %v2305_v41 = vsel %vm3879_vm12, 5.0, %v3878_v58  ;;  %v3881_v59 = vld [vmem:[#allocation34_spill] sm:$0xff]  ;;  %vm3885_vm15 = vcmp.ge.f32.partialorder %v3762_v54, 10.0  ;;  %vm284_vm14 = vcmp.ge.f32.partialorder %v3759_v0, 30.0 }
  0x5d   :  { %vm3882_vm13 = vcmp.ge.f32.partialorder %v3881_v59, 10.0  ;;  %v2315_v43 = vsel %vm3885_vm15, 5.0, %v3884_v13  ;;  %vm285_vm10 = vcmp.ge.f32.partialorder %v3760_v1, 30.0  ;;  %v2324_v32 = vsel %vm336_vm11, 5.0, %v2036_v50  ;;  %v3887_v58 = vld [vmem:[#allocation40_spill] sm:$0xff]  ;;  %v3888_v13 = vld [vmem:[#allocation42_spill] sm:$0xff] }
  0x5e   :  { %v2310_v3 = vsel %vm3882_vm13, 5.0, %v3880_v49  ;;  %3886 = vst [vmem:[#allocation26_spill] sm:$0xff] %v2315_v43  ;;  %v2329_v49 = vsel %vm337_vm2, 5.0, %v3887_v58  ;;  %v3889_v43 = vld [vmem:[#allocation39_spill] sm:$0xff]  ;;  %v3892_v1 = vld [vmem:[#allocation96_spill] sm:$0xff]  ;;  %vm3893_vm12 = vcmp.ge.f32.partialorder %v3766_v19, 10.0 }
  0x5f   :  { %3883 = vst [vmem:[#allocation24_spill] sm:$0xff] %v2310_v3  ;;  %vm3890_vm15 = vcmp.ge.f32.partialorder %v3889_v43, 10.0  ;;  %v2339_v59 = vsel %vm3893_vm12, 5.0, %v3892_v1  ;;  %vm288_vm13 = vcmp.ge.f32.partialorder %v3763_v55, 30.0  ;;  %v2348_v50 = vsel %vm340_vm8, 5.0, %v2060_v9  ;;  %v3895_v58 = vld [vmem:[#allocation97_spill] sm:$0xff] }
  0x60   :  { %v2334_v3 = vsel %vm3890_vm15, 5.0, %v3888_v13  ;;  %3894 = vst [vmem:[#allocation31_spill] sm:$0xff] %v2339_v59  ;;  %vm3896_vm2 = vcmp.ge.f32.partialorder %v3768_v61, 10.0  ;;  %v3897_v1 = vld [vmem:[#allocation98_spill] sm:$0xff]  ;;  %v3898_v59 = vld [vmem:[#allocation44_spill] sm:$0xff]  ;;  %vm3902_vm12 = vcmp.ge.f32.partialorder %v1604_v52, 10.0 }
  0x61   :  { %3891 = vst [vmem:[#allocation30_spill] sm:$0xff] %v2334_v3  ;;  %v2353_v13 = vsel %vm3896_vm2, 5.0, %v3895_v58  ;;  %vm3899_vm15 = vcmp.ge.f32.partialorder %v3898_v59, 10.0  ;;  %v2363_v43 = vsel %vm3902_vm12, 5.0, %v3901_v20  ;;  %vm292_vm0 = vcmp.ge.f32.partialorder %v3767_v44, 30.0  ;;  %v3904_v58 = vld [vmem:[#allocation100_spill] sm:$0xff] }
  0x62   :  { %v2358_v3 = vsel %vm3899_vm15, 5.0, %v3897_v1  ;;  %3903 = vst [vmem:[#allocation36_spill] sm:$0xff] %v2363_v43  ;;  %vm293_vm8 = vcmp.ge.f32.partialorder %v3768_v61, 30.0  ;;  %vm294_vm3 = vcmp.ge.f32.partialorder %v3898_v59, 30.0  ;;  %v2372_v9 = vsel %vm344_vm5, 5.0, %v2084_v14  ;;  %v3905_v20 = vld [vmem:[#allocation101_spill] sm:$0xff] }
  0x63   :  { %3900 = vst [vmem:[#allocation35_spill] sm:$0xff] %v2358_v3  ;;  %v2377_v1 = vsel %vm345_vm7, 5.0, %v3904_v58  ;;  %v2382_v3 = vsel %vm346_vm1, 5.0, %v3905_v20  ;;  %v3908_v61 = vld [vmem:[#allocation102_spill] sm:$0xff]  ;;  %vm3909_vm2 = vcmp.ge.f32.partialorder %v1640_v48, 10.0  ;;  %vm296_vm15 = vcmp.ge.f32.partialorder %v1609_v47, 30.0 }
  0x64   :  { %3907 = vst [vmem:[#allocation40_spill] sm:$0xff] %v2382_v3  ;;  %v2387_v59 = vsel %vm3909_vm2, 5.0, %v3908_v61  ;;  %vm297_vm5 = vcmp.ge.f32.partialorder %v1614_v53, 30.0  ;;  %v2396_v14 = vsel %vm348_vm6, 5.0, %v2108_v2  ;;  %v3911_v58 = vld [vmem:[#allocation103_spill] sm:$0xff]  ;;  %v3912_v61 = vld [vmem:[#allocation104_spill] sm:$0xff] }
  0x65   :  { %3910 = vst [vmem:[#allocation42_spill] sm:$0xff] %v2387_v59  ;;  %v2401_v20 = vsel %vm349_vm4, 5.0, %v3911_v58  ;;  %v3913_v59 = vld [vmem:[#allocation51_spill] sm:$0xff]  ;;  %v3915_v53 = vld [vmem:[#allocation105_spill] sm:$0xff]  ;;  %vm3916_vm7 = vcmp.ge.f32.partialorder %v1667_v8, 10.0  ;;  %vm300_vm2 = vcmp.ge.f32.partialorder %v1645_v63, 30.0 }
  0x66   :  { %vm3914_vm1 = vcmp.ge.f32.partialorder %v3913_v59, 10.0  ;;  %v2411_v43 = vsel %vm3916_vm7, 5.0, %v3915_v53  ;;  %v2420_v2 = vsel %vm352_vm9, 5.0, %v2132_v56  ;;  %v3918_v58 = vld [vmem:[#allocation106_spill] sm:$0xff]  ;;  %vm3919_vm4 = vcmp.ge.f32.partialorder %v1684_v34, 10.0 }
  0x67   :  { %v2406_v3 = vsel %vm3914_vm1, 5.0, %v3912_v61  ;;  %3917 = vst [vmem:[#allocation96_spill] sm:$0xff] %v2411_v43  ;;  %v2425_v61 = vsel %vm3919_vm4, 5.0, %v3918_v58  ;;  %vm3920_vm1 = vcmp.ge.f32.partialorder %v1689_v60, 10.0  ;;  %v3921_v43 = vld [vmem:[#allocation7_spill] sm:$0xff]  ;;  %vm3923_vm4 = vcmp.ge.f32.partialorder %v1242_v10, 30.0 }
  0x68   :  { %v2430_v53 = vsel %vm3920_vm1, 5.0, %v2142_v62  ;;  %vm3922_vm7 = vcmp.ge.f32.partialorder %v3921_v43, 30.0  ;;  %v2444_v56 = vsel %vm3923_vm4, 10.0, %v2156_v45  ;;  %vm3924_vm1 = vcmp.ge.f32.partialorder %v1247_v11, 30.0 }
  0x69   :  { %v2435_v59 = vsel %vm3922_vm7, 10.0, %v2147_v17  ;;  %v2449_v62 = vsel %vm3924_vm1, 10.0, %v2161_v51  ;;  %vm3925_vm7 = vcmp.ge.f32.partialorder %v1261_v15, 30.0  ;;  %vm3926_vm12 = vcmp.ge.f32.partialorder %v1266_v16, 30.0 }
  0x6a   :  { %v2454_v17 = vsel %vm3925_vm7, 10.0, %v2166_v46  ;;  %v2459_v58 = vsel %vm3926_vm12, 10.0, %v2171_v5  ;;  %vm3928_vm1 = vcmp.ge.f32.partialorder %v3739_v42, 30.0  ;;  %vm3929_vm7 = vcmp.ge.f32.partialorder %v3740_v40, 30.0  ;;  %v3930_v5 = vld [vmem:[#allocation11_spill] sm:$0xff]  ;;  %v3943_v40 = vld [vmem:[#allocation9_spill] sm:$0xff] }
  0x6b   :  { %3927 = vst [vmem:[#allocation97_spill] sm:$0xff] %v2459_v58  ;;  %v2468_v45 = vsel %vm3928_vm1, 10.0, %v2180_v24  ;;  %v2473_v51 = vsel %vm3929_vm7, 10.0, %v2185_v6  ;;  %vm3931_vm12 = vcmp.ge.f32.partialorder %v3930_v5, 30.0  ;;  %v3933_v58 = vld [vmem:[#allocation107_spill] sm:$0xff]  ;;  %vm3934_vm11 = vcmp.ge.f32.partialorder %v3742_v25, 30.0 }
  0x6c   :  { %v2478_v46 = vsel %vm3931_vm12, 10.0, %v2190_v4  ;;  %v2483_v15 = vsel %vm3934_vm11, 10.0, %v3933_v58  ;;  %vm3936_vm7 = vcmp.ge.f32.partialorder %v3743_v37, 30.0  ;;  %v3937_v6 = vld [vmem:[#allocation14_spill] sm:$0xff]  ;;  %v3939_v58 = vld [vmem:[#allocation108_spill] sm:$0xff]  ;;  %vm3944_vm4 = vcmp.ge.f32.partialorder %v3746_v35, 30.0 }
  0x6d   :  { %3932 = vst [vmem:[#allocation98_spill] sm:$0xff] %v2478_v46  ;;  %3935 = vst [vmem:[#allocation99_spill] sm:$0xff] %v2483_v15  ;;  %v2492_v24 = vsel %vm3936_vm7, 10.0, %v2204_v23  ;;  %vm3938_vm12 = vcmp.ge.f32.partialorder %v3937_v6, 30.0  ;;  %v3940_v15 = vld [vmem:[#allocation15_spill] sm:$0xff]  ;;  %v2507_v5 = vsel %vm3944_vm4, 10.0, %v3943_v40 }
  0x6e   :  { %v2497_v4 = vsel %vm3938_vm12, 10.0, %v2209_v22  ;;  %vm3941_vm11 = vcmp.ge.f32.partialorder %v3940_v15, 30.0  ;;  %3945 = vst [vmem:[#allocation101_spill] sm:$0xff] %v2507_v5  ;;  %vm3946_vm12 = vcmp.ge.f32.partialorder %v3747_v30, 30.0  ;;  %v3947_v22 = vld [vmem:[#allocation18_spill] sm:$0xff]  ;;  %v3949_v40 = vld [vmem:[#allocation12_spill] sm:$0xff] }
  0x6f   :  { %v2502_v46 = vsel %vm3941_vm11, 10.0, %v3939_v58  ;;  %v2516_v23 = vsel %vm3946_vm12, 10.0, %v2228_v29  ;;  %vm3948_vm11 = vcmp.ge.f32.partialorder %v3947_v22, 30.0  ;;  %v3950_v5 = vld [vmem:[#allocation19_spill] sm:$0xff]  ;;  %v3953_v6 = vld [vmem:[#allocation13_spill] sm:$0xff]  ;;  %vm3954_vm1 = vcmp.ge.f32.partialorder %v3750_v7, 30.0 }
  0x70   :  { %3942 = vst [vmem:[#allocation100_spill] sm:$0xff] %v2502_v46  ;;  %v2521_v58 = vsel %vm3948_vm11, 10.0, %v2233_v28  ;;  %vm3951_vm4 = vcmp.ge.f32.partialorder %v3950_v5, 30.0  ;;  %v2531_v15 = vsel %vm3954_vm1, 10.0, %v3953_v6  ;;  %vm3956_vm11 = vcmp.ge.f32.partialorder %v3751_v12, 30.0  ;;  %v3957_v28 = vld [vmem:[#allocation22_spill] sm:$0xff] }
  0x71   :  { %v2526_v46 = vsel %vm3951_vm4, 10.0, %v3949_v40  ;;  %3955 = vst [vmem:[#allocation103_spill] sm:$0xff] %v2531_v15  ;;  %v2540_v29 = vsel %vm3956_vm11, 10.0, %v2252_v33  ;;  %vm3958_vm4 = vcmp.ge.f32.partialorder %v3957_v28, 30.0  ;;  %v3959_v6 = vld [vmem:[#allocation16_spill] sm:$0xff]  ;;  %v3960_v15 = vld [vmem:[#allocation23_spill] sm:$0xff] }
  0x72   :  { %3952 = vst [vmem:[#allocation102_spill] sm:$0xff] %v2526_v46  ;;  %v2545_v40 = vsel %vm3958_vm4, 10.0, %v2257_v31  ;;  %vm3961_vm1 = vcmp.ge.f32.partialorder %v3960_v15, 30.0  ;;  %v3963_v22 = vld [vmem:[#allocation17_spill] sm:$0xff]  ;;  %vm3964_vm7 = vcmp.ge.f32.partialorder %v3754_v27, 30.0  ;;  %vm3966_vm4 = vcmp.ge.f32.partialorder %v3755_v38, 30.0 }
  0x73   :  { %v2550_v46 = vsel %vm3961_vm1, 10.0, %v3959_v6  ;;  %v2555_v5 = vsel %vm3964_vm7, 10.0, %v3963_v22  ;;  %v2564_v33 = vsel %vm3966_vm4, 10.0, %v2276_v26  ;;  %v3967_v31 = vld [vmem:[#allocation27_spill] sm:$0xff]  ;;  %v3969_v22 = vld [vmem:[#allocation20_spill] sm:$0xff]  ;;  %v3973_v28 = vld [vmem:[#allocation21_spill] sm:$0xff] }
  0x74   :  { %3962 = vst [vmem:[#allocation104_spill] sm:$0xff] %v2550_v46  ;;  %3965 = vst [vmem:[#allocation105_spill] sm:$0xff] %v2555_v5  ;;  %vm3968_vm1 = vcmp.ge.f32.partialorder %v3967_v31, 30.0  ;;  %v3970_v5 = vld [vmem:[#allocation28_spill] sm:$0xff]  ;;  %vm3974_vm12 = vcmp.ge.f32.partialorder %v3758_v18, 30.0  ;;  %vm232_vm9 = vcmp.ge.f32.partialorder %v3755_v38, 50.0 }
  0x75   :  { %v2569_v6 = vsel %vm3968_vm1, 10.0, %v2281_v36  ;;  %vm3971_vm7 = vcmp.ge.f32.partialorder %v3970_v5, 30.0  ;;  %v2579_v15 = vsel %vm3974_vm12, 10.0, %v3973_v28  ;;  %vm233_vm4 = vcmp.ge.f32.partialorder %v3967_v31, 50.0  ;;  %v3977_v28 = vld [vmem:[#allocation24_spill] sm:$0xff]  ;;  %v3981_v31 = vld [vmem:[#allocation26_spill] sm:$0xff] }
  0x76   :  { %v2574_v46 = vsel %vm3971_vm7, 10.0, %v3969_v22  ;;  %3975 = vst [vmem:[#allocation7_spill] sm:$0xff] %v2579_v15  ;;  %v2588_v26 = vsel %vm284_vm14, 10.0, %v2300_v57  ;;  %v2593_v22 = vsel %vm285_vm10, 10.0, %v2305_v41  ;;  %v3978_v15 = vld [vmem:[#allocation34_spill] sm:$0xff]  ;;  %vm3982_vm1 = vcmp.ge.f32.partialorder %v3762_v54, 30.0 }
  0x77   :  { %3972 = vst [vmem:[#allocation106_spill] sm:$0xff] %v2574_v46  ;;  %vm3979_vm12 = vcmp.ge.f32.partialorder %v3978_v15, 30.0  ;;  %v2603_v5 = vsel %vm3982_vm1, 10.0, %v3981_v31  ;;  %vm236_vm7 = vcmp.ge.f32.partialorder %v3759_v0, 50.0  ;;  %v2612_v57 = vsel %vm288_vm13, 10.0, %v2324_v32  ;;  %v3984_v41 = vld [vmem:[#allocation38_spill] sm:$0xff] }
  0x78   :  { %v2598_v46 = vsel %vm3979_vm12, 10.0, %v3977_v28  ;;  %3983 = vst [vmem:[#allocation108_spill] sm:$0xff] %v2603_v5  ;;  %vm3985_vm10 = vcmp.ge.f32.partialorder %v3984_v41, 30.0  ;;  %v3986_v31 = vld [vmem:[#allocation30_spill] sm:$0xff]  ;;  %v3987_v5 = vld [vmem:[#allocation39_spill] sm:$0xff]  ;;  %vm3991_vm1 = vcmp.ge.f32.partialorder %v3766_v19, 30.0 }
  0x79   :  { %3980 = vst [vmem:[#allocation107_spill] sm:$0xff] %v2598_v46  ;;  %v2617_v28 = vsel %vm3985_vm10, 10.0, %v2329_v49  ;;  %vm3988_vm12 = vcmp.ge.f32.partialorder %v3987_v5, 30.0  ;;  %v3990_v36 = vld [vmem:[#allocation31_spill] sm:$0xff]  ;;  %vm240_vm11 = vcmp.ge.f32.partialorder %v3763_v55, 50.0  ;;  %vm241_vm13 = vcmp.ge.f32.partialorder %v3984_v41, 50.0 }
  0x7a   :  { %v2622_v46 = vsel %vm3988_vm12, 10.0, %v3986_v31  ;;  %v2627_v15 = vsel %vm3991_vm1, 10.0, %v3990_v36  ;;  %vm242_vm6 = vcmp.ge.f32.partialorder %v3987_v5, 50.0  ;;  %v2636_v32 = vsel %vm292_vm0, 10.0, %v2348_v50  ;;  %v3993_v49 = vld [vmem:[#allocation43_spill] sm:$0xff]  ;;  %v3998_v41 = vld [vmem:[#allocation36_spill] sm:$0xff] }
  0x7b   :  { %3989 = vst [vmem:[#allocation9_spill] sm:$0xff] %v2622_v46  ;;  %3992 = vst [vmem:[#allocation12_spill] sm:$0xff] %v2627_v15  ;;  %v2641_v31 = vsel %vm293_vm8, 10.0, %v2353_v13  ;;  %v3995_v36 = vld [vmem:[#allocation35_spill] sm:$0xff]  ;;  %v3996_v15 = vld [vmem:[#allocation44_spill] sm:$0xff]  ;;  %vm3999_vm10 = vcmp.ge.f32.partialorder %v1604_v52, 30.0 }
  0x7c   :  { %3994 = vst [vmem:[#allocation13_spill] sm:$0xff] %v2641_v31  ;;  %v2646_v46 = vsel %vm294_vm3, 10.0, %v3995_v36  ;;  %v2651_v5 = vsel %vm3999_vm10, 10.0, %v3998_v41  ;;  %vm244_vm12 = vcmp.ge.f32.partialorder %v3767_v44, 50.0  ;;  %vm245_vm0 = vcmp.ge.f32.partialorder %v3993_v49, 50.0  ;;  %v4003_v31 = vld [vmem:[#allocation49_spill] sm:$0xff] }
  0x7d   :  { %3997 = vst [vmem:[#allocation16_spill] sm:$0xff] %v2646_v46  ;;  %4000 = vst [vmem:[#allocation17_spill] sm:$0xff] %v2651_v5  ;;  %v536_v50 = vsel %vm296_vm15, 10.0, %v2372_v9  ;;  %v537_v36 = vsel %vm297_vm5, 10.0, %v2377_v1  ;;  %v4002_v46 = vld [vmem:[#allocation40_spill] sm:$0xff]  ;;  %vm4004_vm3 = vcmp.ge.f32.partialorder %v4003_v31, 30.0 }
  0x7e   :  { %v538_v41 = vsel %vm4004_vm3, 10.0, %v4002_v46  ;;  %v4005_v5 = vld [vmem:[#allocation42_spill] sm:$0xff]  ;;  %vm4006_vm8 = vcmp.ge.f32.partialorder %v1640_v48, 30.0  ;;  %v540_v9 = vsel %vm300_vm2, 10.0, %v2396_v14  ;;  %vm4007_vm5 = vcmp.ge.f32.partialorder %v1657_v21, 30.0  ;;  %v4008_v46 = vld [vmem:[#allocation51_spill] sm:$0xff] }
  0x7f   :  { %v539_v49 = vsel %vm4006_vm8, 10.0, %v4005_v5  ;;  %v541_v1 = vsel %vm4007_vm5, 10.0, %v2401_v20  ;;  %vm4009_vm3 = vcmp.ge.f32.partialorder %v4008_v46, 30.0  ;;  %v4010_v52 = vld [vmem:[#allocation96_spill] sm:$0xff]  ;;  %vm4011_vm8 = vcmp.ge.f32.partialorder %v1667_v8, 30.0  ;;  %v4077_v46 = vld [vmem:[#allocation46_spill] sm:$0xff] }
  0x80   :  { %v542_v5 = vsel %vm4009_vm3, 10.0, %v2406_v3  ;;  %v543_v13 = vsel %vm4011_vm8, 10.0, %v4010_v52  ;;  %vm252_vm1 = vcmp.ge.f32.partialorder %v1645_v63, 50.0  ;;  %vm4012_vm10 = vcmp.ge.f32.partialorder %v1679_v39, 30.0  ;;  %v4094_v63 = vld [vmem:[#allocation25_spill] sm:$0xff] }
  0x81   :  { %v544_v14 = vsel %vm4012_vm10, 10.0, %v2420_v2  ;;  %vm4013_vm5 = vcmp.ge.f32.partialorder %v1684_v34, 30.0  ;;  %vm4014_vm3 = vcmp.ge.f32.partialorder %v1689_v60, 30.0  ;;  %vm4015_vm8 = vcmp.ge.f32.partialorder %v3921_v43, 50.0  ;;  %v4020_v43 = vld [vmem:[#allocation97_spill] sm:$0xff]  ;;  %v4023_v34 = vld [vmem:[#allocation10_spill] sm:$0xff] }
  0x82   :  { %v545_v3 = vsel %vm4013_vm5, 10.0, %v2425_v61  ;;  %v546_v52 = vsel %vm4014_vm3, 10.0, %v2430_v53  ;;  %v547_v20 = vsel %vm4015_vm8, 20.0, %v2435_v59  ;;  %vm256_vm14 = vcmp.ge.f32.partialorder %v1679_v39, 50.0  ;;  %v4018_v53 = vld [vmem:[#allocation8_spill] sm:$0xff]  ;;  %v4026_v39 = vld [vmem:[#allocation11_spill] sm:$0xff] }
  0x83   :  { %vm4016_vm10 = vcmp.ge.f32.partialorder %v1242_v10, 50.0  ;;  %vm4017_vm5 = vcmp.ge.f32.partialorder %v1247_v11, 50.0  ;;  %vm4019_vm3 = vcmp.ge.f32.partialorder %v4018_v53, 50.0  ;;  %vm4021_vm8 = vcmp.ge.f32.partialorder %v1266_v16, 50.0  ;;  %v4031_v53 = vld [vmem:[#allocation14_spill] sm:$0xff] }
  0x84   :  { %v548_v2 = vsel %vm4016_vm10, 20.0, %v2444_v56  ;;  %v549_v61 = vsel %vm4017_vm5, 20.0, %v2449_v62  ;;  %v550_v8 = vsel %vm4019_vm3, 20.0, %v2454_v17  ;;  %v551_v59 = vsel %vm4021_vm8, 20.0, %v4020_v43  ;;  %v4025_v56 = vld [vmem:[#allocation98_spill] sm:$0xff]  ;;  %v4028_v62 = vld [vmem:[#allocation99_spill] sm:$0xff] }
  0x85   :  { %vm4022_vm2 = vcmp.ge.f32.partialorder %v3739_v42, 50.0  ;;  %vm4024_vm15 = vcmp.ge.f32.partialorder %v4023_v34, 50.0  ;;  %vm4027_vm10 = vcmp.ge.f32.partialorder %v4026_v39, 50.0  ;;  %vm4029_vm5 = vcmp.ge.f32.partialorder %v3742_v25, 50.0  ;;  %v4034_v43 = vld [vmem:[#allocation15_spill] sm:$0xff] }
  0x86   :  { %v552_v60 = vsel %vm4022_vm2, 20.0, %v2468_v45  ;;  %v553_v10 = vsel %vm4024_vm15, 20.0, %v2473_v51  ;;  %v554_v11 = vsel %vm4027_vm10, 20.0, %v4025_v56  ;;  %v555_v17 = vsel %vm4029_vm5, 20.0, %v4028_v62  ;;  %v4033_v45 = vld [vmem:[#allocation100_spill] sm:$0xff]  ;;  %v4036_v51 = vld [vmem:[#allocation101_spill] sm:$0xff] }
  0x87   :  { %vm4030_vm3 = vcmp.ge.f32.partialorder %v3743_v37, 50.0  ;;  %vm4032_vm8 = vcmp.ge.f32.partialorder %v4031_v53, 50.0  ;;  %vm4035_vm2 = vcmp.ge.f32.partialorder %v4034_v43, 50.0  ;;  %vm4037_vm15 = vcmp.ge.f32.partialorder %v3746_v35, 50.0  ;;  %v4039_v56 = vld [vmem:[#allocation18_spill] sm:$0xff]  ;;  %v4042_v62 = vld [vmem:[#allocation19_spill] sm:$0xff] }
  0x88   :  { %v556_v16 = vsel %vm4030_vm3, 20.0, %v2492_v24  ;;  %v557_v42 = vsel %vm4032_vm8, 20.0, %v2497_v4  ;;  %v558_v34 = vsel %vm4035_vm2, 20.0, %v4033_v45  ;;  %v559_v39 = vsel %vm4037_vm15, 20.0, %v4036_v51  ;;  %v4041_v24 = vld [vmem:[#allocation102_spill] sm:$0xff]  ;;  %v4044_v53 = vld [vmem:[#allocation103_spill] sm:$0xff] }
  0x89   :  { %vm4038_vm10 = vcmp.ge.f32.partialorder %v3747_v30, 50.0  ;;  %vm4040_vm5 = vcmp.ge.f32.partialorder %v4039_v56, 50.0  ;;  %vm4043_vm3 = vcmp.ge.f32.partialorder %v4042_v62, 50.0  ;;  %vm4045_vm8 = vcmp.ge.f32.partialorder %v3750_v7, 50.0  ;;  %v4047_v43 = vld [vmem:[#allocation22_spill] sm:$0xff]  ;;  %v4050_v51 = vld [vmem:[#allocation23_spill] sm:$0xff] }
  0x8a   :  { %v560_v25 = vsel %vm4038_vm10, 20.0, %v2516_v23  ;;  %v561_v37 = vsel %vm4040_vm5, 20.0, %v2521_v58  ;;  %v562_v4 = vsel %vm4043_vm3, 20.0, %v4041_v24  ;;  %v563_v45 = vsel %vm4045_vm8, 20.0, %v4044_v53  ;;  %v4049_v23 = vld [vmem:[#allocation104_spill] sm:$0xff]  ;;  %v4052_v56 = vld [vmem:[#allocation105_spill] sm:$0xff] }
  0x8b   :  { %vm4046_vm2 = vcmp.ge.f32.partialorder %v3751_v12, 50.0  ;;  %vm4048_vm15 = vcmp.ge.f32.partialorder %v4047_v43, 50.0  ;;  %vm4051_vm10 = vcmp.ge.f32.partialorder %v4050_v51, 50.0  ;;  %vm4053_vm5 = vcmp.ge.f32.partialorder %v3754_v27, 50.0  ;;  %v4056_v53 = vld [vmem:[#allocation28_spill] sm:$0xff]  ;;  %v4058_v43 = vld [vmem:[#allocation7_spill] sm:$0xff] }
  0x8c   :  { %v564_v35 = vsel %vm4046_vm2, 20.0, %v2540_v29  ;;  %v565_v30 = vsel %vm4048_vm15, 20.0, %v2545_v40  ;;  %v566_v58 = vsel %vm4051_vm10, 20.0, %v4049_v23  ;;  %v567_v24 = vsel %vm4053_vm5, 20.0, %v4052_v56  ;;  %v4055_v29 = vld [vmem:[#allocation106_spill] sm:$0xff]  ;;  %v4060_v51 = vld [vmem:[#allocation32_spill] sm:$0xff] }
  0x8d   :  { %v568_v7 = vsel %vm232_vm9, 20.0, %v2564_v33  ;;  %v569_v12 = vsel %vm233_vm4, 20.0, %v2569_v6  ;;  %vm4057_vm3 = vcmp.ge.f32.partialorder %v4056_v53, 50.0  ;;  %vm4059_vm8 = vcmp.ge.f32.partialorder %v3758_v18, 50.0  ;;  %v4062_v33 = vld [vmem:[#allocation107_spill] sm:$0xff]  ;;  %v4063_v56 = vld [vmem:[#allocation34_spill] sm:$0xff] }
  0x8e   :  { %v570_v40 = vsel %vm4057_vm3, 20.0, %v4055_v29  ;;  %v571_v23 = vsel %vm4059_vm8, 20.0, %v4058_v43  ;;  %v572_v27 = vsel %vm236_vm7, 20.0, %v2588_v26  ;;  %vm4061_vm2 = vcmp.ge.f32.partialorder %v4060_v51, 50.0  ;;  %v4065_v62 = vld [vmem:[#allocation108_spill] sm:$0xff]  ;;  %v4068_v26 = vld [vmem:[#allocation9_spill] sm:$0xff] }
  0x8f   :  { %v573_v38 = vsel %vm4061_vm2, 20.0, %v2593_v22  ;;  %vm4064_vm9 = vcmp.ge.f32.partialorder %v4063_v56, 50.0  ;;  %vm4066_vm4 = vcmp.ge.f32.partialorder %v3762_v54, 50.0  ;;  %v576_v18 = vsel %vm240_vm11, 20.0, %v2612_v57  ;;  %v4070_v51 = vld [vmem:[#allocation12_spill] sm:$0xff]  ;;  %v4072_v56 = vld [vmem:[#allocation13_spill] sm:$0xff] }
  0x90   :  { %v574_v6 = vsel %vm4064_vm9, 20.0, %v4062_v33  ;;  %v575_v29 = vsel %vm4066_vm4, 20.0, %v4065_v62  ;;  %v577_v0 = vsel %vm241_vm13, 20.0, %v2617_v28  ;;  %v578_v22 = vsel %vm242_vm6, 20.0, %v4068_v26  ;;  %v4074_v57 = vld [vmem:[#allocation16_spill] sm:$0xff]  ;;  %v4076_v53 = vld [vmem:[#allocation17_spill] sm:$0xff] }
  0x91   :  { %vm4071_vm7 = vcmp.ge.f32.partialorder %v3766_v19, 50.0  ;;  %v580_v54 = vsel %vm244_vm12, 20.0, %v2636_v32  ;;  %v581_v55 = vsel %vm245_vm0, 20.0, %v4072_v56  ;;  %vm4075_vm11 = vcmp.ge.f32.partialorder %v3996_v15, 50.0  ;;  %v4080_v43 = vld [vmem:[#allocation47_spill] sm:$0xff] }
  0x92   :  { %v579_v33 = vsel %vm4071_vm7, 20.0, %v4070_v51  ;;  %v582_v28 = vsel %vm4075_vm11, 20.0, %v4074_v57  ;;  %vm4078_vm13 = vcmp.ge.f32.partialorder %v4077_v46, 50.0  ;;  %vm4079_vm6 = vcmp.ge.f32.partialorder %v1609_v47, 50.0  ;;  %v4085_v46 = vld [vmem:[#allocation51_spill] sm:$0xff]  ;;  %v4087_v47 = vld [vmem:[#allocation52_spill] sm:$0xff] }
  0x93   :  { %v583_v26 = vsel %vm4078_vm13, 20.0, %v4076_v53  ;;  %v584_v19 = vsel %vm4079_vm6, 20.0, %v536_v50  ;;  %vm4081_vm15 = vcmp.ge.f32.partialorder %v4080_v43, 50.0  ;;  %vm4082_vm12 = vcmp.ge.f32.partialorder %v4003_v31, 50.0  ;;  %v4090_v31 = vld [vmem:[#allocation55_spill] sm:$0xff]  ;;  %v4095_v53 = vld [vmem:[#allocation29_spill] sm:$0xff] }
  0x94   :  { %v585_v51 = vsel %vm4081_vm15, 20.0, %v537_v36  ;;  %v586_v44 = vsel %vm4082_vm12, 20.0, %v538_v41  ;;  %vm4083_vm10 = vcmp.ge.f32.partialorder %v1640_v48, 50.0  ;;  %v588_v15 = vsel %vm252_vm1, 20.0, %v540_v9  ;;  %v4092_v48 = vld [vmem:[#allocation56_spill] sm:$0xff] }
  0x95   :  { %v587_v32 = vsel %vm4083_vm10, 20.0, %v539_v49  ;;  %vm4084_vm0 = vcmp.ge.f32.partialorder %v1657_v21, 50.0  ;;  %vm4086_vm5 = vcmp.ge.f32.partialorder %v4085_v46, 50.0  ;;  %vm4088_vm3 = vcmp.ge.f32.partialorder %v4087_v47, 50.0  ;;  %v4097_v46 = vld [vmem:[#allocation37_spill] sm:$0xff] }
  0x96   :  { %v589_v56 = vsel %vm4084_vm0, 20.0, %v541_v1  ;;  %v590_v62 = vsel %vm4086_vm5, 20.0, %v542_v5  ;;  %v591_v50 = vsel %vm4088_vm3, 20.0, %v543_v13  ;;  %v592_v36 = vsel %vm256_vm14, 20.0, %v544_v14  ;;  %v4096_v1 = vld [vmem:[#allocation33_spill] sm:$0xff] }
  0x97   :  { %vm4091_vm8 = vcmp.ge.f32.partialorder %v4090_v31, 50.0  ;;  %vm4093_vm2 = vcmp.ge.f32.partialorder %v4092_v48, 50.0  ;;  %v596_v9 = vmul.f32 %v547_v20, %v4094_v63  ;;  %v597_v21 = vmul.f32 %v548_v2, %v4095_v53  ;;  %v4098_v47 = vld [vmem:[#allocation41_spill] sm:$0xff]  ;;  %v4105_v53 = vld [vmem:[#allocation58_spill] sm:$0xff] }
  0x98   :  { %v593_v41 = vsel %vm4091_vm8, 20.0, %v545_v3  ;;  %v594_v49 = vsel %vm4093_vm2, 20.0, %v546_v52  ;;  %v598_v43 = vmul.f32 %v549_v61, %v4096_v1  ;;  %v2838_v5 = vmul.f32 %v550_v8, %v4097_v46  ;;  %v4100_v14 = vld [vmem:[#allocation45_spill] sm:$0xff]  ;;  %v4101_v3 = vld [vmem:[#allocation48_spill] sm:$0xff]  ;;  %v4102_v52 = vld [vmem:[#allocation50_spill] sm:$0xff] }
  0x99   :  { %v2841_v13 = vmul.f32 %v551_v59, %v4098_v47  ;;  %vm3649_vm1 = vcmask 662528   ;;  %v2844_v57 = vmul.f32 %v552_v60, %v4100_v14  ;;  %v2847_v31 = vmul.f32 %v553_v10, %v4101_v3  ;;  %v4103_v20 = vld [vmem:[#allocation53_spill] sm:$0xff]  ;;  %v4106_v1 = vld [vmem:[#allocation59_spill] sm:$0xff]  ;;  %v4107_v59 = vld [vmem:[#allocation60_spill] sm:$0xff] }
  0x9a   :  { %v2850_v48 = vmul.f32 %v554_v11, %v4102_v52  ;;  %v604_v2 = vmul.f32 %v555_v17, %v4103_v20  ;;  %v4104_v63 = vld [vmem:[#allocation57_spill] sm:$0xff]  ;;  %v606_v8 = vmul.f32 %v557_v42, %v4105_v53  ;;  %v607_v46 = vmul.f32 %v558_v34, %v4106_v1  ;;  %v4109_v14 = vld [vmem:[#allocation62_spill] sm:$0xff]  ;;  %v4110_v3 = vld [vmem:[#allocation63_spill] sm:$0xff] }
  0x9b   :  { %4099 = vst [vmem:[#allocation20_spill] sm:$0xff] %v2841_v13  ;;  %v605_v61 = vmul.f32 %v556_v16, %v4104_v63  ;;  %v2857_v47 = vmul.f32 %v559_v39, %v4107_v59  ;;  %v4108_v13 = vld [vmem:[#allocation61_spill] sm:$0xff]  ;;  %v2863_v10 = vmul.f32 %v561_v37, %v4109_v14  ;;  %v2866_v11 = vmul.f32 %v562_v4, %v4110_v3  ;;  %v4111_v52 = vld [vmem:[#allocation64_spill] sm:$0xff]  ;;  %v4113_v63 = vld [vmem:[#allocation66_spill] sm:$0xff] }
  0x9c   :  { %v2860_v60 = vmul.f32 %v560_v25, %v4108_v13  ;;  %v612_v17 = vmul.f32 %v563_v45, %v4111_v52  ;;  %v4112_v20 = vld [vmem:[#allocation65_spill] sm:$0xff]  ;;  %v614_v42 = vmul.f32 %v565_v30, %v4113_v63  ;;  %v4114_v53 = vld [vmem:[#allocation67_spill] sm:$0xff]  ;;  %v4115_v1 = vld [vmem:[#allocation68_spill] sm:$0xff]  ;;  %vm3648_vm14 = vcmask 655360  }
  0x9d   :  { %v613_v16 = vmul.f32 %v564_v35, %v4112_v20  ;;  %v615_v34 = vmul.f32 %v566_v58, %v4114_v53  ;;  %v2873_v39 = vmul.f32 %v567_v24, %v4115_v1  ;;  %v4116_v59 = vld [vmem:[#allocation69_spill] sm:$0xff]  ;;  %v4117_v13 = vld [vmem:[#allocation70_spill] sm:$0xff]  ;;  %v4118_v14 = vld [vmem:[#allocation71_spill] sm:$0xff] }
  0x9e   :  { %v2876_v25 = vmul.f32 %v568_v7, %v4116_v59  ;;  %v2879_v37 = vmul.f32 %v569_v12, %v4117_v13  ;;  %v2882_v4 = vmul.f32 %v570_v40, %v4118_v14  ;;  %v4119_v3 = vld [vmem:[#allocation72_spill] sm:$0xff]  ;;  %v4120_v52 = vld [vmem:[#allocation73_spill] sm:$0xff]  ;;  %v4121_v20 = vld [vmem:[#allocation74_spill] sm:$0xff] }
  0x9f   :  { %v620_v45 = vmul.f32 %v571_v23, %v4119_v3  ;;  %v621_v35 = vmul.f32 %v572_v27, %v4120_v52  ;;  %v622_v30 = vmul.f32 %v573_v38, %v4121_v20  ;;  %v4122_v63 = vld [vmem:[#allocation75_spill] sm:$0xff]  ;;  %v4123_v53 = vld [vmem:[#allocation76_spill] sm:$0xff]  ;;  %v4124_v1 = vld [vmem:[#allocation77_spill] sm:$0xff] }
  0xa0   :  { %v623_v58 = vmul.f32 %v574_v6, %v4122_v63  ;;  %v2889_v24 = vmul.f32 %v575_v29, %v4123_v53  ;;  %v2892_v7 = vmul.f32 %v576_v18, %v4124_v1  ;;  %v4125_v59 = vld [vmem:[#allocation78_spill] sm:$0xff]  ;;  %v4126_v13 = vld [vmem:[#allocation79_spill] sm:$0xff]  ;;  %v4128_v14 = vld [vmem:[#allocation80_spill] sm:$0xff] }
  0xa1   :  { %v2895_v12 = vmul.f32 %v577_v0, %v4125_v59  ;;  %v2898_v40 = vmul.f32 %v578_v22, %v4126_v13  ;;  %v628_v23 = vmul.f32 %v579_v33, %v4128_v14  ;;  %v4129_v3 = vld [vmem:[#allocation81_spill] sm:$0xff]  ;;  %v4130_v52 = vld [vmem:[#allocation82_spill] sm:$0xff]  ;;  %v4131_v20 = vld [vmem:[#allocation83_spill] sm:$0xff] }
  0xa2   :  { %v629_v27 = vmul.f32 %v580_v54, %v4129_v3  ;;  %v630_v38 = vmul.f32 %v581_v55, %v4130_v52  ;;  %v631_v6 = vmul.f32 %v582_v28, %v4131_v20  ;;  %v4132_v63 = vld [vmem:[#allocation84_spill] sm:$0xff]  ;;  %v4133_v53 = vld [vmem:[#allocation85_spill] sm:$0xff]  ;;  %v4134_v1 = vld [vmem:[#allocation86_spill] sm:$0xff] }
  0xa3   :  { %4127 = vst [vmem:[#allocation21_spill] sm:$0xff] %v2898_v40  ;;  %v2905_v29 = vmul.f32 %v583_v26, %v4132_v63  ;;  %v2908_v18 = vmul.f32 %v584_v19, %v4133_v53  ;;  %v2911_v0 = vmul.f32 %v585_v51, %v4134_v1  ;;  %v4135_v59 = vld [vmem:[#allocation87_spill] sm:$0xff]  ;;  %v4136_v13 = vld [vmem:[#allocation88_spill] sm:$0xff]  ;;  %v4137_v14 = vld [vmem:[#allocation89_spill] sm:$0xff]  ;;  %v645_v19 = vsel %vm3649_vm1, %v596_v9, 0.0 }
  0xa4   :  { %v2914_v22 = vmul.f32 %v586_v44, %v4135_v59  ;;  %v636_v33 = vmul.f32 %v587_v32, %v4136_v13  ;;  %v637_v54 = vmul.f32 %v588_v15, %v4137_v14  ;;  %v4138_v3 = vld [vmem:[#allocation90_spill] sm:$0xff]  ;;  %v4139_v52 = vld [vmem:[#allocation91_spill] sm:$0xff]  ;;  %v4140_v20 = vld [vmem:[#allocation92_spill] sm:$0xff]  ;;  %v646_v51 = vsel %vm3649_vm1, %v604_v2, 0.0 }
  0xa5   :  { %v638_v55 = vmul.f32 %v589_v56, %v4138_v3  ;;  %v639_v28 = vmul.f32 %v590_v62, %v4139_v52  ;;  %v640_v26 = vmul.f32 %v591_v50, %v4140_v20  ;;  %v4141_v63 = vld [vmem:[#allocation93_spill] sm:$0xff]  ;;  %v648_v44 = vsel %vm3649_vm1, %v612_v17, 0.0  ;;  %v4142_v53 = vld [vmem:[#allocation94_spill] sm:$0xff]  ;;  %v4143_v32 = vld [vmem:[#allocation95_spill] sm:$0xff] }
  0xa6   :  { %v2922_v40 = vmul.f32 %v592_v36, %v4141_v63  ;;  %v2928_v1 = vmul.f32 %v593_v41, %v4142_v53  ;;  %v2931_v15 = vmul.f32 %v594_v49, %v4143_v32  ;;  %v647_v56 = vadd.f32 %v646_v51, %v645_v19  ;;  %v4144_v51 = vld [vmem:[#allocation20_spill] sm:$0xff] }
  0xa7   :  { %v656_v62 = vsel %vm3649_vm1, %v597_v21, 0.0  ;;  %v650_v50 = vsel %vm3649_vm1, %v620_v45, 0.0  ;;  %v652_v36 = vsel %vm3649_vm1, %v628_v23, 0.0  ;;  %v657_v59 = vsel %vm3649_vm1, %v605_v61, 0.0 }
  0xa8   :  { %v659_v9 = vsel %vm3649_vm1, %v613_v16, 0.0  ;;  %v649_v2 = vadd.f32 %v648_v44, %v647_v56  ;;  %v654_v17 = vsel %vm3649_vm1, %v636_v33, 0.0  ;;  %v658_v13 = vadd.f32 %v657_v59, %v656_v62 }
  0xa9   :  { %v667_v41 = vsel %vm3649_vm1, %v598_v43, 0.0  ;;  %v661_v49 = vsel %vm3649_vm1, %v621_v35, 0.0  ;;  %v663_v14 = vsel %vm3649_vm1, %v629_v27, 0.0  ;;  %v668_v21 = vsel %vm3649_vm1, %v606_v8, 0.0 }
  0xaa   :  { %v670_v45 = vsel %vm3649_vm1, %v614_v42, 0.0  ;;  %v651_v3 = vadd.f32 %v650_v50, %v649_v2  ;;  %v660_v23 = vadd.f32 %v659_v9, %v658_v13  ;;  %v665_v61 = vsel %vm3649_vm1, %v637_v54, 0.0 }
  0xab   :  { %v669_v52 = vadd.f32 %v668_v21, %v667_v41  ;;  %v672_v16 = vsel %vm3649_vm1, %v622_v30, 0.0  ;;  %v678_v33 = vsel %vm3649_vm1, %v2838_v5, 0.0  ;;  %v679_v43 = vsel %vm3649_vm1, %v607_v46, 0.0 }
  0xac   :  { %v681_v35 = vsel %vm3649_vm1, %v615_v34, 0.0  ;;  %v653_v20 = vadd.f32 %v652_v36, %v651_v3  ;;  %v662_v27 = vadd.f32 %v661_v49, %v660_v23  ;;  %v680_v8 = vadd.f32 %v679_v43, %v678_v33  ;;  %v4145_v33 = vld [vmem:[#allocation21_spill] sm:$0xff] }
  0xad   :  { %v671_v63 = vadd.f32 %v670_v45, %v669_v52  ;;  %v674_v42 = vsel %vm3649_vm1, %v630_v38, 0.0  ;;  %v683_v19 = vsel %vm3649_vm1, %v623_v58, 0.0  ;;  %v689_v54 = vsel %vm3649_vm1, %v4144_v51, 0.0 }
  0xae   :  { %v690_v30 = vsel %vm3649_vm1, %v2857_v47, 0.0  ;;  %v664_v44 = vadd.f32 %v663_v14, %v662_v27  ;;  %v676_v46 = vsel %vm3649_vm1, %v638_v55, 0.0  ;;  %v682_v53 = vadd.f32 %v681_v35, %v680_v8 }
  0xaf   :  { %v673_v5 = vadd.f32 %v672_v16, %v671_v63  ;;  %v685_v34 = vsel %vm3649_vm1, %v631_v6, 0.0  ;;  %v687_v32 = vsel %vm3649_vm1, %v639_v28, 0.0  ;;  %v691_v56 = vadd.f32 %v690_v30, %v689_v54 }
  0xb0   :  { %v692_v38 = vsel %vm3649_vm1, %v2873_v39, 0.0  ;;  %v655_v58 = vadd.f32 %v654_v17, %v653_v20  ;;  %v684_v50 = vadd.f32 %v683_v19, %v682_v53  ;;  %v694_v36 = vsel %vm3649_vm1, %v2889_v24, 0.0 }
  0xb1   :  { %v675_v62 = vadd.f32 %v674_v42, %v673_v5  ;;  %v693_v47 = vadd.f32 %v692_v38, %v691_v56  ;;  %v700_v59 = vsel %vm3649_vm1, %v2844_v57, 0.0  ;;  %v701_v55 = vsel %vm3649_vm1, %v2860_v60, 0.0  ;;  %v3030_v56 = vld [vmem:[%s3529_s1 + $0x18] sm:$0xff] }
  0xb2   :  { %v703_v6 = vsel %vm3649_vm1, %v2876_v25, 0.0  ;;  %v666_v28 = vadd.f32 %v665_v61, %v664_v44  ;;  %v686_v9 = vadd.f32 %v685_v34, %v684_v50  ;;  %v696_v39 = vsel %vm3649_vm1, %v2905_v29, 0.0  ;;  %v3048_v50 = vld [vmem:[%s3529_s1 + $0x30] sm:$0xff] }
  0xb3   :  { %v702_v2 = vadd.f32 %v701_v55, %v700_v59  ;;  %v695_v17 = vadd.f32 %v694_v36, %v693_v47  ;;  %v698_v13 = vsel %vm3649_vm1, %v640_v26, 0.0  ;;  %v705_v24 = vsel %vm3649_vm1, %v2892_v7, 0.0  ;;  %v3054_v36 = vld [vmem:[%s3529_s1 + $0x38] sm:$0x1]  ;;  %v3061_v59 = vld [vmem:[%s3529_s1 + $0x40] sm:$0xff]  ;;  %v3067_v55 = vld [vmem:[%s3529_s1 + $0x48] sm:$0xff] }
  0xb4   :  { %v711_v57 = vsel %vm3649_vm1, %v2847_v31, 0.0  ;;  %v677_v41 = vadd.f32 %v676_v46, %v675_v62  ;;  %v712_v25 = vsel %vm3649_vm1, %v2863_v10, 0.0  ;;  %v714_v49 = vsel %vm3649_vm1, %v2879_v37, 0.0  ;;  %v3042_v62 = vld [vmem:[%s3529_s1 + $0x28] sm:$0xff] }
  0xb5   :  { %v704_v60 = vadd.f32 %v703_v6, %v702_v2  ;;  %v697_v14 = vadd.f32 %v696_v39, %v695_v17  ;;  %v707_v29 = vsel %vm3649_vm1, %v2908_v18, 0.0  ;;  %v709_v26 = vsel %vm3649_vm1, %v2922_v40, 0.0  ;;  %v3073_v6 = vld [vmem:[%s3529_s1 + $0x50] sm:$0xff]  ;;  %v3085_v39 = vld [vmem:[%s3529_s1 + $0x60] sm:$0xff]  ;;  %v3091_v2 = vld [vmem:[%s3529_s1 + $0x68] sm:$0xff] }
  0xb6   :  { %v713_v21 = vadd.f32 %v712_v25, %v711_v57  ;;  %v688_v7 = vadd.f32 %v687_v32, %v686_v9  ;;  %v716_v31 = vsel %vm3649_vm1, %v2895_v12, 0.0  ;;  %v723_v10 = vsel %vm3648_vm14, %v2850_v48, 0.0  ;;  %v3024_v32 = vld [vmem:[%s3529_s1 + $0x10] sm:$0xff]  ;;  %v3115_v57 = vld [vmem:[%s3529_s1 + $0x88] sm:$0xff] }
  0xb7   :  { %v706_v45 = vadd.f32 %v705_v24, %v704_v60  ;;  %v724_v37 = vsel %vm3648_vm14, %v2866_v11, 0.0  ;;  %v734_v23 = vsel %vm3649_vm1, %v655_v58, 0.0  ;;  %v718_v40 = vsel %vm3649_vm1, %v2911_v0, 0.0  ;;  %v3036_v58 = vld [vmem:[%s3529_s1 + $0x20] sm:$0xff]  ;;  %v3097_v17 = vld [vmem:[%s3529_s1 + $0x70] sm:$0xff]  ;;  %v3127_v60 = vld [vmem:[%s3529_s1 + $0x98] sm:$0xff] }
  0xb8   :  { %v715_v3 = vadd.f32 %v714_v49, %v713_v21  ;;  %v725_v61 = vadd.f32 %v724_v37, %v723_v10  ;;  %v726_v52 = vsel %vm3648_vm14, %v2882_v4, 0.0  ;;  %v699_v16 = vadd.f32 %v698_v13, %v697_v14  ;;  %v3103_v13 = vld [vmem:[%s3529_s1 + $0x78] sm:$0x1]  ;;  %v3109_v24 = vld [vmem:[%s3529_s1 + $0x80] sm:$0xff]  ;;  %v3139_v14 = vld [vmem:[%s3529_s1 + $0xa8] sm:$0xff] }
  0xb9   :  { %v708_v18 = vadd.f32 %v707_v29, %v706_v45  ;;  %v728_v43 = vsel %vm3648_vm14, %v4145_v33, 0.0  ;;  %v735_v48 = vsel %vm3649_vm1, %v666_v28, 0.0  ;;  %v720_v11 = vsel %vm3649_vm1, %v2928_v1, 0.0  ;;  %v3079_v28 = vld [vmem:[%s3529_s1 + $0x58] sm:$0xff]  ;;  %v3133_v49 = vld [vmem:[%s3529_s1 + $0xa0] sm:$0xff]  ;;  %v3145_v29 = vld [vmem:[%s3529_s1 + $0xb0] sm:$0xff] }
  0xba   :  { %v717_v12 = vadd.f32 %v716_v31, %v715_v3  ;;  %v727_v35 = vadd.f32 %v726_v52, %v725_v61  ;;  %v736_v20 = vadd.f32 %v735_v48, %v734_v23  ;;  %v737_v27 = vsel %vm3649_vm1, %v677_v41, 0.0  ;;  %v3121_v41 = vld [vmem:[%s3529_s1 + $0x90] sm:$0xff]  ;;  %v3157_v21 = vld [vmem:[%s3529_s1 + $0xc0] sm:$0xff]  ;;  %v3175_v31 = vld [vmem:[%s3529_s1 + $0xd8] sm:$0xff] }
  0xbb   :  { %v710_v63 = vadd.f32 %v709_v26, %v708_v18  ;;  %v730_v8 = vsel %vm3648_vm14, %v2914_v22, 0.0  ;;  %v739_v4 = vsel %vm3649_vm1, %v688_v7, 0.0  ;;  %v732_v54 = vsel %vm3648_vm14, %v2931_v15, 0.0  ;;  %v3012_v22 = vld [vmem:[%s3529_s1] sm:$0xff]  ;;  %v3018_v15 = vld [vmem:[%s3529_s1 + $0x8] sm:$0xff]  ;;  %v3169_v45 = vld [vmem:[%s3529_s1 + $0xd0] sm:$0xff] }
  0xbc   :  { %v719_v0 = vadd.f32 %v718_v40, %v717_v12  ;;  %v729_v42 = vadd.f32 %v728_v43, %v727_v35  ;;  %v738_v19 = vadd.f32 %v737_v27, %v736_v20  ;;  %v741_v30 = vsel %vm3649_vm1, %v699_v16, 0.0  ;;  %v3151_v26 = vld [vmem:[%s3529_s1 + $0xb8] sm:$0x1]  ;;  %v3163_v7 = vld [vmem:[%s3529_s1 + $0xc8] sm:$0xff]  ;;  %v3181_v3 = vld [vmem:[%s3529_s1 + $0xe0] sm:$0xff] }
  0xbd   :  { %v743_v5 = vsel %vm3649_vm1, %v710_v63, 0.0  ;;  %vm763_vm9 = vcmp.ne.f32.partialorder %v3012_v22, 0.0  ;;  %vm764_vm4 = vcmp.ne.f32.partialorder %v3018_v15, 0.0  ;;  %vm765_vm7 = vcmp.ne.f32.partialorder %v3024_v32, 0.0  ;;  %v3187_v10 = vld [vmem:[%s3529_s1 + $0xe8] sm:$0xff]  ;;  %v3193_v37 = vld [vmem:[%s3529_s1 + $0xf0] sm:$0xff] }
  0xbe   :  { %v721_v51 = vadd.f32 %v720_v11, %v719_v0  ;;  %v731_v1 = vadd.f32 %v730_v8, %v729_v42  ;;  %v740_v44 = vadd.f32 %v739_v4, %v738_v19  ;;  %vm766_vm11 = vcmp.ne.f32.partialorder %v3030_v56, 0.0  ;;  %v3199_v23 = vld [vmem:[%s3529_s1 + $0xf8] sm:$0x1]  ;;  %v3205_v18 = vld [vmem:[%s3529_s1 + $0x100] sm:$0xff]  ;;  %v3211_v40 = vld [vmem:[%s3529_s1 + $0x108] sm:$0xff] }
  0xbf   :  { %vm767_vm13 = vcmp.ne.f32.partialorder %v3036_v58, 0.0  ;;  %vm768_vm6 = vcmp.ne.f32.partialorder %v3042_v62, 0.0  ;;  %vm769_vm15 = vcmp.ne.f32.partialorder %v3048_v50, 0.0  ;;  %vm770_vm12 = vcmp.ne.f32.partialorder %v3054_v36, 0.0  ;;  %v3217_v61 = vld [vmem:[%s3529_s1 + $0x110] sm:$0xff]  ;;  %v3223_v52 = vld [vmem:[%s3529_s1 + $0x118] sm:$0xff] }
  0xc0   :  { %v733_v46 = vadd.f32 %v732_v54, %v731_v1  ;;  %v742_v53 = vadd.f32 %v741_v30, %v740_v44  ;;  %v745_v34 = vsel %vm3649_vm1, %v721_v51, 0.0  ;;  %vm771_vm10 = vcmp.ne.f32.partialorder %v3061_v59, 0.0  ;;  %v1154_v16 = vld [vmem:[%s3529_s1 + $0x120] sm:$0xff]  ;;  %v1155_v12 = vld [vmem:[%s3529_s1 + $0x128] sm:$0xff]  ;;  %v1156_v33 = vld [vmem:[%s3529_s1 + $0x130] sm:$0xff] }
  0xc1   :  { %vm772_vm0 = vcmp.ne.f32.partialorder %v3067_v55, 0.0  ;;  %vm773_vm5 = vcmp.ne.f32.partialorder %v3073_v6, 0.0  ;;  %vm774_vm3 = vcmp.ne.f32.partialorder %v3079_v28, 0.0  ;;  %v1157_v43 = vld [vmem:[%s3529_s1 + $0x138] sm:$0x1]  ;;  %v1158_v48 = vld [vmem:[%s3529_s1 + $0x140] sm:$0xff] }
  0xc2   :  { %v744_v38 = vadd.f32 %v743_v5, %v742_v53  ;;  %v747_v47 = vsel %vm3648_vm14, %v733_v46, 0.0  ;;  %v1159_v11 = vld [vmem:[%s3529_s1 + $0x148] sm:$0xff]  ;;  %v1160_v35 = vld [vmem:[%s3529_s1 + $0x150] sm:$0xff]  ;;  %v1161_v20 = vld [vmem:[%s3529_s1 + $0x158] sm:$0xff]  ;;  %v1189_v63 = vmov 0.0  }
  0xc3   :  { %vm804_vm1 = vcmp.ne.f32.partialorder %v1159_v11, 0.0  ;;  %vm805_vm2 = vcmp.ne.f32.partialorder %v1160_v35, 0.0  ;;  %vm806_vm14 = vcmp.ne.f32.partialorder %v1161_v20, 0.0  ;;  %v1162_v27 = vld [vmem:[%s3529_s1 + $0x160] sm:$0xff]  ;;  %v1058_v0 = vsel %vm763_vm9, 1.0, %v1189_v63  ;;  %v1163_v19 = vld [vmem:[%s3529_s1 + $0x168] sm:$0xff] }
  0xc4   :  { %v746_v9 = vadd.f32 %v745_v34, %v744_v38  ;;  %v1059_v8 = vsel %vm764_vm4, 1.0, %v1189_v63  ;;  %v3262_v4 = vsel %vm765_vm7, 1.0, %v1189_v63  ;;  %v3267_v42 = vsel %vm766_vm11, 1.0, %v1189_v63  ;;  %v1164_v51 = vld [vmem:[%s3529_s1 + $0x170] sm:$0xff]  ;;  %v1165_v54 = vld [vmem:[%s3529_s1 + $0x178] sm:$0x1] }
  0xc5   :  { %vm808_vm8 = vcmp.ne.f32.partialorder %v1163_v19, 0.0  ;;  %vm809_vm9 = vcmp.ne.f32.partialorder %v1164_v51, 0.0  ;;  %vm810_vm4 = vcmp.ne.f32.partialorder %v1165_v54, 0.0  ;;  %v3281_v30 = vsel %vm767_vm13, 1.0, %v1189_v63 }
  0xc6   :  { %v748_v25 = vadd.f32 %v747_v47, %v746_v9  ;;  %v3286_v1 = vsel %vm768_vm6, 1.0, %v1189_v63  ;;  %v3291_v44 = vsel %vm769_vm15, 1.0, %v1189_v63  ;;  %v3296_v5 = vsel %vm770_vm12, 1.0, %v1189_v63 }
  0xc7   :  { %v1066_v46 = vsel %vm771_vm10, 1.0, %v1189_v63  ;;  %v1067_v53 = vsel %vm772_vm0, 1.0, %v1189_v63  ;;  %v1068_v34 = vsel %vm773_vm5, 1.0, %v1189_v63  ;;  %v1069_v22 = vsel %vm774_vm3, 1.0, %v1189_v63 }
  0xc8   :  { %749 = vadd.xlane.f32.xlu0 %v748_v25  ;;  %vm4146_vm7 = vcmp.ne.f32.partialorder %v3085_v39, 0.0  ;;  %vm4147_vm11 = vcmp.ne.f32.partialorder %v3091_v2, 0.0  ;;  %vm4148_vm13 = vcmp.ne.f32.partialorder %v3097_v17, 0.0  ;;  %vm4149_vm6 = vcmp.ne.f32.partialorder %v3103_v13, 0.0 }
  0xc9   :  { %v3313_v15 = vsel %vm4146_vm7, 1.0, %v1189_v63  ;;  %v3318_v32 = vsel %vm4147_vm11, 1.0, %v1189_v63  ;;  %v3323_v56 = vsel %vm4148_vm13, 1.0, %v1189_v63  ;;  %v3328_v38 = vsel %vm4149_vm6, 1.0, %v1189_v63 }
  0xca   :  { %vm4150_vm15 = vcmp.ne.f32.partialorder %v3109_v24, 0.0  ;;  %vm4151_vm12 = vcmp.ne.f32.partialorder %v3115_v57, 0.0  ;;  %vm4152_vm10 = vcmp.ne.f32.partialorder %v3121_v41, 0.0  ;;  %vm4153_vm0 = vcmp.ne.f32.partialorder %v3127_v60, 0.0 }
  0xcb   :  { %v1074_v58 = vsel %vm4150_vm15, 1.0, %v1189_v63  ;;  %v1075_v62 = vsel %vm4151_vm12, 1.0, %v1189_v63  ;;  %v1076_v50 = vsel %vm4152_vm10, 1.0, %v1189_v63  ;;  %v1077_v36 = vsel %vm4153_vm0, 1.0, %v1189_v63 }
  0xcc   :  { %vm4154_vm5 = vcmp.ne.f32.partialorder %v3133_v49, 0.0  ;;  %vm4155_vm3 = vcmp.ne.f32.partialorder %v3139_v14, 0.0  ;;  %vm4156_vm7 = vcmp.ne.f32.partialorder %v3145_v29, 0.0  ;;  %vm4157_vm11 = vcmp.ne.f32.partialorder %v3151_v26, 0.0 }
  0xcd   :  { %v3345_v47 = vsel %vm4154_vm5, 1.0, %v1189_v63  ;;  %v3350_v59 = vsel %vm4155_vm3, 1.0, %v1189_v63  ;;  %v3355_v55 = vsel %vm4156_vm7, 1.0, %v1189_v63  ;;  %v3360_v6 = vsel %vm4157_vm11, 1.0, %v1189_v63 }
  0xce   :  { %vm4158_vm13 = vcmp.ne.f32.partialorder %v3157_v21, 0.0  ;;  %vm4159_vm6 = vcmp.ne.f32.partialorder %v3163_v7, 0.0  ;;  %vm4160_vm15 = vcmp.ne.f32.partialorder %v3169_v45, 0.0  ;;  %vm4161_vm12 = vcmp.ne.f32.partialorder %v3175_v31, 0.0 }
  0xcf   :  { %v1082_v28 = vsel %vm4158_vm13, 1.0, %v1189_v63  ;;  %v1083_v9 = vsel %vm4159_vm6, 1.0, %v1189_v63  ;;  %v1084_v39 = vsel %vm4160_vm15, 1.0, %v1189_v63  ;;  %v1085_v2 = vsel %vm4161_vm12, 1.0, %v1189_v63 }
  0xd0   :  { %vm4162_vm10 = vcmp.ne.f32.partialorder %v3181_v3, 0.0  ;;  %vm4163_vm0 = vcmp.ne.f32.partialorder %v3187_v10, 0.0  ;;  %vm4164_vm5 = vcmp.ne.f32.partialorder %v3193_v37, 0.0  ;;  %vm4165_vm3 = vcmp.ne.f32.partialorder %v3199_v23, 0.0 }
  0xd1   :  { %v3377_v17 = vsel %vm4162_vm10, 1.0, %v1189_v63  ;;  %v3382_v13 = vsel %vm4163_vm0, 1.0, %v1189_v63  ;;  %v3387_v24 = vsel %vm4164_vm5, 1.0, %v1189_v63  ;;  %v3392_v57 = vsel %vm4165_vm3, 1.0, %v1189_v63 }
  0xd2   :  { %vm4166_vm7 = vcmp.ne.f32.partialorder %v3205_v18, 0.0  ;;  %vm4167_vm11 = vcmp.ne.f32.partialorder %v3211_v40, 0.0  ;;  %vm4168_vm13 = vcmp.ne.f32.partialorder %v3217_v61, 0.0  ;;  %vm4169_vm6 = vcmp.ne.f32.partialorder %v3223_v52, 0.0 }
  0xd3   :  { %v1090_v41 = vsel %vm4166_vm7, 1.0, %v1189_v63  ;;  %v1091_v60 = vsel %vm4167_vm11, 1.0, %v1189_v63  ;;  %v1092_v25 = vsel %vm4168_vm13, 1.0, %v1189_v63  ;;  %v1093_v49 = vsel %vm4169_vm6, 1.0, %v1189_v63 }
  0xd4   :  { %vm4170_vm15 = vcmp.ne.f32.partialorder %v1154_v16, 0.0  ;;  %vm4171_vm12 = vcmp.ne.f32.partialorder %v1155_v12, 0.0  ;;  %vm4172_vm10 = vcmp.ne.f32.partialorder %v1156_v33, 0.0  ;;  %vm4173_vm0 = vcmp.ne.f32.partialorder %v1157_v43, 0.0 }
  0xd5   :  { %v1094_v14 = vsel %vm4170_vm15, 1.0, %v1189_v63  ;;  %v3410_v29 = vsel %vm4171_vm12, 1.0, %v1189_v63  ;;  %v3414_v26 = vsel %vm4172_vm10, 1.0, %v1189_v63  ;;  %v3418_v21 = vsel %vm4173_vm0, 1.0, %v1189_v63 }
  0xd6   :  { %vm4174_vm5 = vcmp.ne.f32.partialorder %v1158_v48, 0.0  ;;  %v1099_v45 = vsel %vm804_vm1, 1.0, %v1189_v63  ;;  %v1100_v31 = vsel %vm805_vm2, 1.0, %v1189_v63  ;;  %v1101_v3 = vsel %vm806_vm14, 1.0, %v1189_v63 }
  0xd7   :  { %v1098_v7 = vsel %vm4174_vm5, 1.0, %v1189_v63  ;;  %vm4175_vm3 = vcmp.ne.f32.partialorder %v1162_v27, 0.0  ;;  %vm4176_vm7 = vcmask 662528   ;;  %v1103_v40 = vsel %vm808_vm8, 1.0, %v1189_v63 }
  0xd8   :  { %v1102_v10 = vsel %vm4175_vm3, 1.0, %v1189_v63  ;;  %v907_v37 = vsel %vm4176_vm7, %v1058_v0, 0.0  ;;  %vm4177_vm11 = vmmov %vm4176_vm7  ;;  %v3437_v61 = vsel %vm809_vm9, 1.0, %v1189_v63  ;;  %v3441_v52 = vsel %vm810_vm4, 1.0, %v1189_v63 }
  0xd9   :  { %v908_v23 = vsel %vm4177_vm11, %v1066_v46, 0.0  ;;  %vm4178_vm13 = vmmov %vm4176_vm7 }
  0xda   :  { %v910_v18 = vsel %vm4178_vm13, %v1074_v58, 0.0  ;;  %v909_v16 = vadd.f32 %v908_v23, %v907_v37  ;;  %vm4179_vm1 = vmmov %vm4176_vm7 }
  0xdb   :  { %v912_v12 = vsel %vm4179_vm1, %v1082_v28, 0.0  ;;  %vm4180_vm14 = vmmov %vm4179_vm1 }
  0xdc   :  { %v918_v33 = vsel %vm4180_vm14, %v1059_v8, 0.0  ;;  %vm4181_vm2 = vmmov %vm4179_vm1  ;;  %v911_v11 = vadd.f32 %v910_v18, %v909_v16 }
  0xdd   :  { %v919_v43 = vsel %vm4181_vm2, %v1067_v53, 0.0  ;;  %vm4182_vm6 = vmmov %vm4179_vm1 }
  0xde   :  { %v921_v48 = vsel %vm4182_vm6, %v1075_v62, 0.0  ;;  %vm4183_vm15 = vmmov %vm4179_vm1  ;;  %v920_v27 = vadd.f32 %v919_v43, %v918_v33  ;;  %v913_v8 = vadd.f32 %v912_v12, %v911_v11 }
  0xdf   :  { %v914_v35 = vsel %vm4183_vm15, %v1090_v41, 0.0  ;;  %vm4184_vm8 = vmmov %vm4179_vm1 }
  0xe0   :  { %v916_v20 = vsel %vm4184_vm8, %v1098_v7, 0.0  ;;  %vm4185_vm9 = vmmov %vm4179_vm1  ;;  %v922_v46 = vadd.f32 %v921_v48, %v920_v27  ;;  %v915_v7 = vadd.f32 %v914_v35, %v913_v8 }
  0xe1   :  { %v923_v0 = vsel %vm4185_vm9, %v1083_v9, 0.0  ;;  %vm4186_vm4 = vmmov %vm4179_vm1 }
  0xe2   :  { %v929_v19 = vsel %vm4186_vm4, %v3262_v4, 0.0  ;;  %vm4187_vm12 = vmmov %vm4179_vm1  ;;  %v924_v4 = vadd.f32 %v923_v0, %v922_v46 }
  0xe3   :  { %v930_v51 = vsel %vm4187_vm12, %v1068_v34, 0.0  ;;  %vm4188_vm10 = vmmov %vm4179_vm1 }
  0xe4   :  { %v932_v54 = vsel %vm4188_vm10, %v1076_v50, 0.0  ;;  %vm4189_vm0 = vmmov %vm4179_vm1  ;;  %v931_v58 = vadd.f32 %v930_v51, %v929_v19 }
  0xe5   :  { %v925_v53 = vsel %vm4189_vm0, %v1091_v60, 0.0  ;;  %vm4190_vm5 = vmmov %vm4189_vm0 }
  0xe6   :  { %v934_v62 = vsel %vm4190_vm5, %v1084_v39, 0.0  ;;  %vm4191_vm3 = vmmov %vm4189_vm0  ;;  %v933_v37 = vadd.f32 %v932_v54, %v931_v58  ;;  %v926_v18 = vadd.f32 %v925_v53, %v924_v4 }
  0xe7   :  { %v940_v28 = vsel %vm4191_vm3, %v3267_v42, 0.0  ;;  %vm4192_vm7 = vmmov %vm4189_vm0 }
  0xe8   :  { %v941_v41 = vsel %vm4192_vm7, %v1069_v22, 0.0  ;;  %vm4193_vm11 = vmmov %vm4189_vm0  ;;  %v935_v16 = vadd.f32 %v934_v62, %v933_v37 }
  0xe9   :  { %v943_v9 = vsel %vm4193_vm11, %v1077_v36, 0.0  ;;  %v942_v34 = vadd.f32 %v941_v41, %v940_v28  ;;  %vm4194_vm13 = vmmov %vm4189_vm0 }
  0xea   :  { %v927_v50 = vsel %vm4194_vm13, %v1099_v45, 0.0  ;;  %vm4195_vm1 = vmmov %vm4189_vm0  ;;  %v917_v45 = vadd.f32 %v916_v20, %v915_v7 }
  0xeb   :  { %v936_v23 = vsel %vm4195_vm1, %v1092_v25, 0.0  ;;  %vm4196_vm14 = vmmov %vm4189_vm0  ;;  %v944_v22 = vadd.f32 %v943_v9, %v942_v34 }
  0xec   :  { %v945_v60 = vsel %vm4196_vm14, %v1085_v2, 0.0  ;;  %vm4197_vm2 = vmmov %vm4189_vm0  ;;  %v937_v2 = vadd.f32 %v936_v23, %v935_v16 }
  0xed   :  { %v951_v39 = vsel %vm4197_vm2, %v3281_v30, 0.0  ;;  %vm4198_vm6 = vmmov %vm4189_vm0  ;;  %v946_v43 = vadd.f32 %v945_v60, %v944_v22 }
  0xee   :  { %v938_v42 = vsel %vm4198_vm6, %v1100_v31, 0.0  ;;  %vm4199_vm15 = vmmov %vm4189_vm0 }
  0xef   :  { %v947_v36 = vsel %vm4199_vm15, %v1093_v49, 0.0  ;;  %vm4200_vm8 = vmmov %vm4189_vm0  ;;  %v963_v49 = vsel %vm4189_vm0, %v3318_v32, 0.0  ;;  %v939_v0 = vadd.f32 %v938_v42, %v937_v2 }
  0xf0   :  { %v949_v12 = vsel %vm4200_vm8, %v1101_v3, 0.0  ;;  %vm4201_vm9 = vmmov %vm4189_vm0  ;;  %v948_v20 = vadd.f32 %v947_v36, %v946_v43  ;;  %vm4215_vm8 = vcmask 655360  }
  0xf1   :  { %v952_v33 = vsel %vm4201_vm9, %v3313_v15, 0.0  ;;  %vm4202_vm4 = vmmov %vm4189_vm0  ;;  %v928_v15 = vadd.f32 %v927_v50, %v926_v18  ;;  %v984_v46 = vsel %vm4215_vm8, %v3296_v5, 0.0  ;;  %v995_v5 = vsel %vm4189_vm0, %v917_v45, 0.0 }
  0xf2   :  { %v954_v25 = vsel %vm4202_vm4, %v3345_v47, 0.0  ;;  %v953_v48 = vadd.f32 %v952_v33, %v951_v39  ;;  %vm4203_vm12 = vmmov %vm4189_vm0  ;;  %v950_v53 = vadd.f32 %v949_v12, %v948_v20 }
  0xf3   :  { %v956_v30 = vsel %vm4203_vm12, %v3377_v17, 0.0  ;;  %vm4204_vm10 = vmmov %vm4189_vm0 }
  0xf4   :  { %v962_v31 = vsel %vm4204_vm10, %v3286_v1, 0.0  ;;  %vm4205_vm5 = vmmov %vm4189_vm0  ;;  %v955_v11 = vadd.f32 %v954_v25, %v953_v48 }
  0xf5   :  { %v965_v3 = vsel %vm4205_vm5, %v3350_v59, 0.0  ;;  %vm4206_vm3 = vmmov %vm4189_vm0  ;;  %v964_v35 = vadd.f32 %v963_v49, %v962_v31 }
  0xf6   :  { %v958_v47 = vsel %vm4206_vm3, %v1094_v14, 0.0  ;;  %vm4207_vm7 = vmmov %vm4189_vm0  ;;  %v957_v19 = vadd.f32 %v956_v30, %v955_v11 }
  0xf7   :  { %v960_v27 = vsel %vm4207_vm7, %v1102_v10, 0.0  ;;  %vm4208_vm11 = vmmov %vm4189_vm0  ;;  %v966_v32 = vadd.f32 %v965_v3, %v964_v35 }
  0xf8   :  { %v967_v17 = vsel %vm4208_vm11, %v3382_v13, 0.0  ;;  %vm4209_vm13 = vmmov %vm4189_vm0  ;;  %v959_v8 = vadd.f32 %v958_v47, %v957_v19 }
  0xf9   :  { %v973_v1 = vsel %vm4209_vm13, %v3291_v44, 0.0  ;;  %vm4210_vm1 = vmmov %vm4189_vm0  ;;  %v968_v13 = vadd.f32 %v967_v17, %v966_v32 }
  0xfa   :  { %v974_v59 = vsel %vm4210_vm1, %v3323_v56, 0.0  ;;  %vm4211_vm14 = vmmov %vm4189_vm0 }
  0xfb   :  { %v969_v51 = vsel %vm4211_vm14, %v3410_v29, 0.0  ;;  %vm4212_vm2 = vmmov %vm4189_vm0  ;;  %v975_v54 = vadd.f32 %v974_v59, %v973_v1 }
  0xfc   :  { %v971_v14 = vsel %vm4212_vm2, %v1103_v40, 0.0  ;;  %vm4213_vm6 = vmmov %vm4189_vm0  ;;  %v970_v40 = vadd.f32 %v969_v51, %v968_v13 }
  0xfd   :  { %v976_v10 = vsel %vm4213_vm6, %v3355_v55, 0.0  ;;  %vm4214_vm15 = vmmov %vm4189_vm0 }
  0xfe   :  { %v978_v44 = vsel %vm4214_vm15, %v3387_v24, 0.0  ;;  %v977_v58 = vadd.f32 %v976_v10, %v975_v54  ;;  %vm4216_vm9 = vmmov %vm4215_vm8  ;;  %v961_v24 = vadd.f32 %v960_v27, %v959_v8  ;;  %v972_v37 = vadd.f32 %v971_v14, %v970_v40 }
  0xff   :  { %v985_v56 = vsel %vm4216_vm9, %v3328_v38, 0.0  ;;  %vm4217_vm4 = vmmov %vm4215_vm8  ;;  %vm16_vm8 = vcmask 0  }
 0x100   :  { %v987_v29 = vsel %vm4217_vm4, %v3360_v6, 0.0  ;;  %vm4218_vm12 = vmmov %vm4189_vm0  ;;  %v986_v62 = vadd.f32 %v985_v56, %v984_v46  ;;  %v979_v41 = vadd.f32 %v978_v44, %v977_v58  ;;  %17 = vst.msk [vmem:[#allocation2] sm:$0x1] %vm16_vm8, %v1189_v63  ;;  %v1039_v46 = vlaneseq }
 0x101   :  { %v980_v55 = vsel %vm4218_vm12, %v3414_v26, 0.0  ;;  %vm4219_vm10 = vmmov %vm4217_vm4  ;;  %18 = vst.msk [vmem:[#allocation3] sm:$0x1] %vm16_vm8, %v1189_v63 }
 0x102   :  { %v989_v28 = vsel %vm4219_vm10, %v3392_v57, 0.0  ;;  %vm4220_vm5 = vmmov %vm4189_vm0  ;;  %v988_v7 = vadd.f32 %v987_v29, %v986_v62  ;;  %v981_v34 = vadd.f32 %v980_v55, %v979_v41 }
 0x103   :  { %v996_v9 = vsel %vm4220_vm5, %v928_v15, 0.0  ;;  %vm4221_vm3 = vmmov %vm4189_vm0 }
 0x104   :  { %v982_v38 = vsel %vm4221_vm3, %v3437_v61, 0.0  ;;  %v997_v4 = vadd.f32 %v996_v9, %v995_v5  ;;  %vm4222_vm7 = vmmov %vm4189_vm0  ;;  %v990_v50 = vadd.f32 %v989_v28, %v988_v7 }
 0x105   :  { %v998_v6 = vsel %vm4222_vm7, %v939_v0, 0.0  ;;  %vm4223_vm11 = vmmov %vm4217_vm4  ;;  %v983_v60 = vadd.f32 %v982_v38, %v981_v34 }
 0x106   :  { %v991_v26 = vsel %vm4223_vm11, %v3418_v21, 0.0  ;;  %vm4224_vm13 = vmmov %vm4189_vm0  ;;  %v999_v23 = vadd.f32 %v998_v6, %v997_v4 }
 0x107   :  { %v1000_v57 = vsel %vm4224_vm13, %v950_v53, 0.0  ;;  %vm4225_vm1 = vmmov %vm4217_vm4  ;;  %v992_v61 = vadd.f32 %v991_v26, %v990_v50  ;;  %v595_v17 = vld [vmem:[#allocation2] sm:$0x1]  ;;  %v1040_v53 = vshrl.u32 %v1039_v46, 7 }
 0x108   :  { %v993_v39 = vsel %vm4225_vm1, %v3441_v52, 0.0  ;;  %vm4226_vm14 = vmmov %vm4189_vm0  ;;  %v1001_v16 = vadd.f32 %v1000_v57, %v999_v23  ;;  %v1190_v52 = vmov 0   ;;  %v762_v19 = vld [vmem:[#allocation3] sm:$0x1] }
 0x109   :  { %v1002_v18 = vsel %vm4226_vm14, %v961_v24, 0.0  ;;  %vm4227_vm2 = vmmov %vm4189_vm0  ;;  %v994_v22 = vadd.f32 %v993_v39, %v992_v61  ;;  %1114 = vset.pattern.permute.xlu1 %v1190_v52  ;;  %1115 = vset.pattern.permute.xlu0 %v1190_v52  ;;  %v1041_v58 = vsub.s32 0, %v1040_v53 }
 0x10a   :  { %v1004_v42 = vsel %vm4227_vm2, %v972_v37, 0.0  ;;  %v1003_v36 = vadd.f32 %v1002_v18, %v1001_v16  ;;  %vm4228_vm6 = vmmov %vm4189_vm0 }
 0x10b   :  { %v1006_v12 = vsel %vm4228_vm6, %v983_v60, 0.0  ;;  %vm4229_vm15 = vmmov %vm4225_vm1 }
 0x10c   :  { %v1005_v33 = vadd.f32 %v1004_v42, %v1003_v36  ;;  %v1008_v21 = vsel %vm4229_vm15, %v994_v22, 0.0 }
 0x10e   :  { %v1007_v25 = vadd.f32 %v1006_v12, %v1005_v33 }
 0x110   :  { %v1009_v45 = vadd.f32 %v1008_v21, %v1007_v25 }
 0x112   :  { %1010 = vadd.xlane.f32.xlu0 %v1009_v45 }
 0x151   :  { %v750_v2 = vpop.xlane.xlu0 %749 }
 0x152   :  { %v751_v43 = vrot.slane %v750_v2, 4 }
 0x154   :  { %v752_v48 = vadd.f32 %v751_v43, %v750_v2 }
 0x156   :  { %v753_v30 = vrot.slane %v752_v48, 2 }
 0x158   :  { %v754_v31 = vadd.f32 %v753_v30, %v752_v48 }
 0x15a   :  { %v755_v49 = vrot.slane %v754_v31, 1 }
 0x15c   :  { %v756_v3 = vadd.f32 %v755_v49, %v754_v31 }
 0x15e   :  { %1106 = vpush %v756_v3 }
 0x18f   :  { %s1107_s1 = spop %1106 }
 0x190   :  { %v758_v63 = vstv %s1107_s1 }
 0x191   :  { %v759_v0 = vadd.f32 %v758_v63, %v595_v17 }
 0x193   :  { %761 = vst.msk [vmem:[#allocation2] sm:$0x1] %vm16_vm8, %v759_v0 }
 0x19a   :  { %v1025_v54 = vld [vmem:[#allocation2] sm:$0x1] }
 0x19b   :  { %v1011_v15 = vpop.xlane.xlu0 %1010  ;;  %v1032_v13 = vmul.f32 3.6098478e-05, %v1025_v54 }
 0x19c   :  { %v1012_v11 = vrot.slane %v1011_v15, 4 }
 0x19e   :  { %v1013_v47 = vadd.f32 %v1012_v11, %v1011_v15 }
 0x1a0   :  { %v1014_v35 = vrot.slane %v1013_v47, 2 }
 0x1a2   :  { %v1015_v20 = vadd.f32 %v1014_v35, %v1013_v47 }
 0x1a4   :  { %v1016_v27 = vrot.slane %v1015_v20, 1 }
 0x1a6   :  { %v1017_v1 = vadd.f32 %v1016_v27, %v1015_v20 }
 0x1a8   :  { %1108 = vpush %v1017_v1 }
 0x1d9   :  { %s1109_s13 = spop %1108 }
 0x1da   :  { %v1019_v32 = vstv %s1109_s13 }
 0x1db   :  { %v1020_v59 = vadd.f32 %v1019_v32, %v762_v19 }
 0x1dd   :  { %1021 = vst.msk [vmem:[#allocation3] sm:$0x1] %vm16_vm8, %v1020_v59 }
 0x1e4   :  { %v1026_v51 = vld [vmem:[#allocation3] sm:$0x1] }
 0x1e5   :  { %v1027_v14 = vmax.f32 %v1026_v51, 1.0  ;;  %vm1030_vm9 = vcmp.eq.f32.partialorder %v1026_v51, 0.0 }
 0x1e7   :  { %1116 = vrcp.f32 %v1027_v14 }
 0x1f4   :  { %v1117_v10 = vpop.eup %1116 }
 0x1f5   :  { %v1029_v8 = vmul.f32 %v1117_v10, %v1025_v54 }
 0x1f7   :  { %v1033_v44 = vsel %vm1030_vm9, %v1032_v13, %v1029_v8 }
 0x1f8   :  { %1036 = vperm.xlu1 %1114, %v1033_v44  }
 0x273   :  { %v1037_v56 = vpop.permute.xlu1 %1036 }
 0x274   :  { %v1042_v29 = vrot.slane %v1037_v56, %v1041_v58 }
 0x276   :  { %1043 = vst [vmem:[#allocation4] sm:$0x1] %v1042_v29 }
 0x277   :  { %1177 = shalt.err (!%p1174_p4)
}
 0x278   :  { %1053 = dma.vmem_to_hbm [thread:$0]  %s1051_s15, 16, %s3530_s2, [#allocation5]  }
 0x279   :  { %1186 = dma.done.wait [#allocation5], 16  }
 0x27a   :  { %1187 = vsyncadd [#allocation5], 4294967280 }
 0x27b   :  { %1057 = vsyncpa [#allocation5], 1 }

</bundles_post_ra>
